<compile_context>
chip_gen: v6e
topology: v6e:2x2x1
jax: 0.10.0
libtpu: 0.0.40
codegen_flags: <defaults>
</compile_context>

<pallas_src>
import numpy as np
import jax
import jax.numpy as jnp
from jax import lax
from jax.experimental import pallas as pl
from jax.experimental.pallas import tpu as pltpu


def _round_up(x, m):
    return ((x + m - 1) // m) * m


def _vmem_limit_bytes():
    try:
        cap = int(pltpu.get_tpu_info().vmem_capacity_bytes)
    except Exception:
        cap = 64 * 1024 * 1024          # conservative fallback (v7x physical)
    return max(32 * 1024 * 1024, (cap * 3) // 4)


def _make_kernel(B, H, W, KP, CP, G, cnt, eps, lastblock):
    inv_cnt = 1.0 / float(cnt)
    M = B * H * W

    def kernel(xr_ref, w_ref, gam_ref, bet_ref, gc_ref, o_ref):
        # xr_ref : (B, H+2, W, KP)  bf16  width-im2col rows (kx stacked on lanes,
        #                                 one constant-1 lane for the conv bias)
        # w_ref  : (3, KP, CP)      bf16  per-ky weight slabs (bias folded into ky=0)
        # gam/bet: (1, CP)          f32   GroupNorm affine params (zero-padded lanes)
        # gc_ref : (G, CP)          f32   lane-dense channel->group one-hot map
        # o_ref  : (B, H, W, CP)    bf16
        acc = None
        for ky in range(3):                         # static unroll: 3 MXU matmuls
            lhs = xr_ref[:, ky:ky + H, :, :].reshape(M, KP)
            part = jnp.dot(lhs, w_ref[ky], preferred_element_type=jnp.float32)
            acc = part if acc is None else acc + part
        acc3 = acc.reshape(B, H * W, CP)            # f32, conv output (+bias)

        # ---- GroupNorm (fused, single-pass stats, all f32) -------------------------
        s1 = jnp.sum(acc3, axis=1)                  # (B, CP)
        s2 = jnp.sum(acc3 * acc3, axis=1)           # (B, CP)
        gmap = gc_ref[...]                          # (G, CP)
        dims = (((1,), (1,)), ((), ()))
        sum_g = lax.dot_general(s1, gmap, dims, preferred_element_type=jnp.float32)
        ssq_g = lax.dot_general(s2, gmap, dims, preferred_element_type=jnp.float32)
        mean_g = sum_g * inv_cnt                    # (B, G)
        var_g = jnp.maximum(ssq_g * inv_cnt - mean_g * mean_g, 0.0)
        inv_g = lax.rsqrt(var_g + eps)
        mean_c = jnp.dot(mean_g, gmap, preferred_element_type=jnp.float32)  # (B, CP)
        inv_c = jnp.dot(inv_g, gmap, preferred_element_type=jnp.float32)    # (B, CP)
        a = inv_c * gam_ref[...]                    # per-column scale
        b = bet_ref[...] - mean_c * a               # per-column shift
        y = acc3 * a[:, None, :] + b[:, None, :]    # normalize + affine (one pass)

        # ---- Activation (f32 VPU/EUP math), fused with the lane-dense bf16 store ---
        if lastblock:
            z = jnp.clip(y, -30.0, 30.0)
            y = pl.reciprocal(1.0 + jnp.exp(-z), approx=True)               # Sigmoid
        else:
            # Mish(x) = x * tanh(softplus(x)) = x * (u^2 - 1) / (u^2 + 1), u = 1+exp(x)
            u = 1.0 + jnp.exp(jnp.minimum(y, 20.0))
            u2 = u * u
            y = y * (u2 - 1.0) * pl.reciprocal(u2 + 1.0, approx=True)

        o_ref[...] = y.reshape(B, H, W, CP).astype(o_ref.dtype)

    return kernel


def _nearest_upsample_nchw(x, size):
    # matches torch.nn.Upsample(size=size, mode='nearest')
    n, c, h, w = x.shape
    ho, wo = size
    hi = (jnp.arange(ho) * h) // ho
    wi = (jnp.arange(wo) * w) // wo
    return x[:, :, hi[:, None], wi[None, :]]


def decoder_block_pallas(x_nchw, wT, bias, gamma, beta, num_groups,
                         size=None, lastblock=False, eps=1e-5,
                         samples_per_block=None):
    """x_nchw: (N, Cin, H, W); wT: ConvTranspose2d weight (Cin, Cout, 3, 3)."""
    N, Cin, H, W = x_nchw.shape
    Cout = wT.shape[1]
    G = num_groups
    assert Cout % G == 0

    Kraw = 3 * Cin                       # kx-stacked contraction length
    KP = _round_up(Kraw + 1, 128)        # +1 lane carries the conv bias
    CP = _round_up(Cout, 128)

    vmem_limit = _vmem_limit_bytes()

    # ---- pick B (samples per grid step) ------------------------------------------
    rows_per_sample = H * W
    if samples_per_block is None:
        B = max(1, min(N, max(1, 512 // max(rows_per_sample, 1))))
    else:
        B = max(1, min(int(samples_per_block), N))
    if N >= 2:
        B = min(B, max(1, N // 2))       # grid >= 2 steps -> both v7x TCs get work

    def _block_bytes(b):
        in_b = b * (H + 2) * W * KP * 2          # bf16 input block
        out_b = b * H * W * CP * 2               # bf16 output block
        w_b = 3 * KP * CP * 2                    # resident weight slabs
        scr = b * H * W * CP * 4 * 2             # f32 acc + epilogue temporaries
        return 2 * in_b + 2 * out_b + w_b + scr  # double-buffered in/out

    while B > 1 and _block_bytes(B) > vmem_limit // 2:
        B -= 1
    N_pad = _round_up(N, B)

    # ---- wrapper glue: layout only (bf16 early, width im2col, kx on lanes) --------
    x_nhwc = jnp.transpose(x_nchw, (0, 2, 3, 1)).astype(jnp.bfloat16)       # (N,H,W,Cin)
    xpad = jnp.pad(x_nhwc, ((0, 0), (1, 1), (1, 1), (0, 0)))                # (N,H+2,W+2,Cin)
    xcols = jnp.stack([xpad[:, :, kx:kx + W, :] for kx in range(3)], axis=3)
    xr = xcols.reshape(N, H + 2, W, Kraw)                                   # lane = kx*Cin+ci
    ones = jnp.ones((N, H + 2, W, 1), jnp.bfloat16)                         # bias lane
    xr = jnp.concatenate([xr, ones], axis=-1)
    xr = jnp.pad(xr, ((0, N_pad - N), (0, 0), (0, 0), (0, KP - (Kraw + 1))))

    # ConvTranspose2d(s=1, p=1, k=3) == Conv2d(p=1) with flipped, channel-swapped weights.
    taps = jnp.flip(wT.astype(jnp.float32), axis=(2, 3)).transpose(2, 3, 0, 1)  # (ky,kx,Cin,Cout)
    slabs = []
    for ky in range(3):
        wk = taps[ky].reshape(Kraw, Cout)                        # row = kx*Cin + ci
        slab = jnp.zeros((KP, CP), jnp.float32).at[:Kraw, :Cout].set(wk)
        if ky == 0:
            slab = slab.at[Kraw, :Cout].set(bias.astype(jnp.float32))   # bias row
        slabs.append(slab)
    w_all = jnp.stack(slabs, axis=0).astype(jnp.bfloat16)        # (3, KP, CP)

    gam_t = jnp.zeros((1, CP), jnp.float32).at[0, :Cout].set(gamma.astype(jnp.float32))
    bet_t = jnp.zeros((1, CP), jnp.float32).at[0, :Cout].set(beta.astype(jnp.float32))

    cpg = Cout // G
    grp = jnp.arange(Cout) // cpg
    gc_core = (jnp.arange(G)[:, None] == grp[None, :]).astype(jnp.float32)   # (G, Cout)
    gc = jnp.zeros((G, CP), jnp.float32).at[:, :Cout].set(gc_core)

    cnt = H * W * cpg
    kernel = _make_kernel(B, H, W, KP, CP, G, cnt, eps, lastblock)

    out_flat = pl.pallas_call(
        kernel,
        out_shape=jax.ShapeDtypeStruct((N_pad, H, W, CP), jnp.bfloat16),
        grid_spec=pltpu.PrefetchScalarGridSpec(
            num_scalar_prefetch=0,
            grid=(N_pad // B,),
            in_specs=[
                pl.BlockSpec((B, H + 2, W, KP), lambda i: (i, 0, 0, 0)),
                pl.BlockSpec((3, KP, CP), lambda i: (0, 0, 0)),
                pl.BlockSpec((1, CP), lambda i: (0, 0)),
                pl.BlockSpec((1, CP), lambda i: (0, 0)),
                pl.BlockSpec((G, CP), lambda i: (0, 0)),
            ],
            out_specs=pl.BlockSpec((B, H, W, CP), lambda i: (i, 0, 0, 0)),
        ),
        compiler_params=pltpu.CompilerParams(
            dimension_semantics=("parallel",),
            vmem_limit_bytes=vmem_limit),
    )(xr, w_all, gam_t, bet_t, gc)

    # glue: slice padding away, back to NCHW f32 (module semantics), optional upsample
    out = out_flat[:N, :, :, :Cout].astype(jnp.float32).transpose(0, 3, 1, 2)
    if size is not None:
        out = _nearest_upsample_nchw(out, size)   # TODO(synk): pure gather, kept as JAX glue
    return out


def decoder_block_reference(x_nchw, wT, bias, gamma, beta, num_groups,
                            size=None, lastblock=False, eps=1e-5):
    """Pure-JAX f32 reference mirroring the PyTorch module semantics."""
    N, Cin, H, W = x_nchw.shape
    conv_w = jnp.flip(wT, axis=(2, 3)).transpose(1, 0, 2, 3)  # (Cout, Cin, 3, 3)
    out = lax.conv_general_dilated(
        x_nchw.astype(jnp.float32), conv_w.astype(jnp.float32),
        window_strides=(1, 1), padding=((1, 1), (1, 1)),
        dimension_numbers=('NCHW', 'OIHW', 'NCHW'), precision='highest')
    out = out + bias[None, :, None, None]
    C = out.shape[1]
    g = out.reshape(N, num_groups, C // num_groups, H, W)
    mean = g.mean(axis=(2, 3, 4), keepdims=True)
    var = ((g - mean) ** 2).mean(axis=(2, 3, 4), keepdims=True)
    g = (g - mean) * lax.rsqrt(var + eps)
    out = g.reshape(N, C, H, W) * gamma[None, :, None, None] + beta[None, :, None, None]
    if lastblock:
        out = 1.0 / (1.0 + jnp.exp(-out))
    else:
        sp = jnp.maximum(out, 0.0) + jnp.log1p(jnp.exp(-jnp.abs(out)))
        out = out * jnp.tanh(sp)
    if size is not None:
        out = _nearest_upsample_nchw(out, size)
    return out


if __name__ == "__main__":
    # small shapes consistent with the module's forward
    N, Cin, Cout, H, W = 2, 4, 8, 16, 16
    num_groups = 2

    key = jax.random.PRNGKey(0)
    k0, k1, k2, k3, k4 = jax.random.split(key, 5)
    x = jax.random.normal(k0, (N, Cin, H, W), jnp.float32)
    wT = 0.1 * jax.random.normal(k1, (Cin, Cout, 3, 3), jnp.float32)   # ConvTranspose2d weight
    bias = 0.1 * jax.random.normal(k2, (Cout,), jnp.float32)
    gamma = 1.0 + 0.1 * jax.random.normal(k3, (Cout,), jnp.float32)
    beta = 0.1 * jax.random.normal(k4, (Cout,), jnp.float32)

    # tolerance accounts for bf16 MXU inputs + bf16 store (accumulation is f32)
    RTOL = ATOL = 2e-2

    # Config 1: intermediate block (Mish activation + nearest upsample to 24x24)
    out1 = jax.block_until_ready(
        decoder_block_pallas(x, wT, bias, gamma, beta, num_groups,
                             size=(24, 24), lastblock=False))
    ref1 = jax.block_until_ready(
        decoder_block_reference(x, wT, bias, gamma, beta, num_groups,
                                size=(24, 24), lastblock=False))
    assert out1.shape == (N, Cout, 24, 24), out1.shape
    np.testing.assert_allclose(np.asarray(out1), np.asarray(ref1), rtol=RTOL, atol=ATOL)

    # Config 2: last block (Sigmoid activation, no upsample)
    out2 = jax.block_until_ready(
        decoder_block_pallas(x, wT, bias, gamma, beta, num_groups,
                             size=None, lastblock=True))
    ref2 = jax.block_until_ready(
        decoder_block_reference(x, wT, bias, gamma, beta, num_groups,
                                size=None, lastblock=True))
    assert out2.shape == (N, Cout, H, W), out2.shape
    np.testing.assert_allclose(np.asarray(out2), np.asarray(ref2), rtol=RTOL, atol=ATOL)

    print("KERNEL_OK")
</pallas_src>

<mosaic_0001>
module attributes {stable_mosaic.version = 11 : i64} {
  func.func @kernel(%arg0: i32, %arg1: memref<1x18x16x128xbf16, #tpu.memory_space<vmem>>, %arg2: memref<3x128x128xbf16, #tpu.memory_space<vmem>>, %arg3: memref<1x128xf32, #tpu.memory_space<vmem>>, %arg4: memref<1x128xf32, #tpu.memory_space<vmem>>, %arg5: memref<2x128xf32, #tpu.memory_space<vmem>>, %arg6: memref<1x16x16x128xbf16, #tpu.memory_space<vmem>>) attributes {dimension_semantics = [#tpu.dimension_semantics<parallel>], iteration_bounds = array<i64: 2>, scalar_prefetch = 0 : i64, scratch_operands = 0 : i64, tpu.core_type = #tpu.core_type<tc>, window_params = [{transform_indices = @transform_0, window_bounds = array<i64: 1, 18, 16, 128>}, {pipeline_mode = #tpu.pipeline_mode<synchronous>, transform_indices = @transform_1, window_bounds = array<i64: 3, 128, 128>}, {pipeline_mode = #tpu.pipeline_mode<synchronous>, transform_indices = @transform_2, window_bounds = array<i64: 1, 128>}, {pipeline_mode = #tpu.pipeline_mode<synchronous>, transform_indices = @transform_3, window_bounds = array<i64: 1, 128>}, {pipeline_mode = #tpu.pipeline_mode<synchronous>, transform_indices = @transform_4, window_bounds = array<i64: 2, 128>}, {transform_indices = @transform_5, window_bounds = array<i64: 1, 16, 16, 128>}]} {
    %c0 = arith.constant 0 : index
    %c0_0 = arith.constant 0 : index
    %c0_1 = arith.constant 0 : index
    %c0_2 = arith.constant 0 : index
    %0 = vector.load %arg1[%c0, %c0_0, %c0_1, %c0_2] : memref<1x18x16x128xbf16, #tpu.memory_space<vmem>>, vector<1x16x16x128xbf16>
    %1 = vector.shape_cast %0 : vector<1x16x16x128xbf16> to vector<256x128xbf16>
    %c0_3 = arith.constant 0 : index
    %c0_4 = arith.constant 0 : index
    %c0_5 = arith.constant 0 : index
    %2 = vector.load %arg2[%c0_3, %c0_4, %c0_5] : memref<3x128x128xbf16, #tpu.memory_space<vmem>>, vector<1x128x128xbf16>
    %3 = vector.shape_cast %2 : vector<1x128x128xbf16> to vector<128x128xbf16>
    %cst = arith.constant dense<0.000000e+00> : vector<256x128xf32>
    %4 = tpu.matmul %1, %3, %cst {dimension_numbers = #tpu.dot_dimension_numbers<[1], [0], [0], [1], [0, 0, 1, 1], [], []>} : vector<256x128xbf16>, vector<128x128xbf16>, vector<256x128xf32> -> vector<256x128xf32>
    %c0_6 = arith.constant 0 : index
    %c1 = arith.constant 1 : index
    %c0_7 = arith.constant 0 : index
    %c0_8 = arith.constant 0 : index
    %5 = vector.load %arg1[%c0_6, %c1, %c0_7, %c0_8] : memref<1x18x16x128xbf16, #tpu.memory_space<vmem>>, vector<1x16x16x128xbf16>
    %6 = vector.shape_cast %5 : vector<1x16x16x128xbf16> to vector<256x128xbf16>
    %c1_9 = arith.constant 1 : index
    %c0_10 = arith.constant 0 : index
    %c0_11 = arith.constant 0 : index
    %7 = vector.load %arg2[%c1_9, %c0_10, %c0_11] : memref<3x128x128xbf16, #tpu.memory_space<vmem>>, vector<1x128x128xbf16>
    %8 = vector.shape_cast %7 : vector<1x128x128xbf16> to vector<128x128xbf16>
    %cst_12 = arith.constant dense<0.000000e+00> : vector<256x128xf32>
    %9 = tpu.matmul %6, %8, %cst_12 {dimension_numbers = #tpu.dot_dimension_numbers<[1], [0], [0], [1], [0, 0, 1, 1], [], []>} : vector<256x128xbf16>, vector<128x128xbf16>, vector<256x128xf32> -> vector<256x128xf32>
    %10 = arith.addf %4, %9 : vector<256x128xf32>
    %c0_13 = arith.constant 0 : index
    %c2 = arith.constant 2 : index
    %c0_14 = arith.constant 0 : index
    %c0_15 = arith.constant 0 : index
    %11 = vector.load %arg1[%c0_13, %c2, %c0_14, %c0_15] : memref<1x18x16x128xbf16, #tpu.memory_space<vmem>>, vector<1x16x16x128xbf16>
    %12 = vector.shape_cast %11 : vector<1x16x16x128xbf16> to vector<256x128xbf16>
    %c2_16 = arith.constant 2 : index
    %c0_17 = arith.constant 0 : index
    %c0_18 = arith.constant 0 : index
    %13 = vector.load %arg2[%c2_16, %c0_17, %c0_18] : memref<3x128x128xbf16, #tpu.memory_space<vmem>>, vector<1x128x128xbf16>
    %14 = vector.shape_cast %13 : vector<1x128x128xbf16> to vector<128x128xbf16>
    %cst_19 = arith.constant dense<0.000000e+00> : vector<256x128xf32>
    %15 = tpu.matmul %12, %14, %cst_19 {dimension_numbers = #tpu.dot_dimension_numbers<[1], [0], [0], [1], [0, 0, 1, 1], [], []>} : vector<256x128xbf16>, vector<128x128xbf16>, vector<256x128xf32> -> vector<256x128xf32>
    %16 = arith.addf %10, %15 : vector<256x128xf32>
    %17 = vector.shape_cast %16 : vector<256x128xf32> to vector<1x256x128xf32>
    %cst_20 = arith.constant dense<0.000000e+00> : vector<1x128xf32>
    %18 = vector.multi_reduction <add>, %17, %cst_20 [1] : vector<1x256x128xf32> to vector<1x128xf32>
    %19 = arith.mulf %17, %17 : vector<1x256x128xf32>
    %cst_21 = arith.constant dense<0.000000e+00> : vector<1x128xf32>
    %20 = vector.multi_reduction <add>, %19, %cst_21 [1] : vector<1x256x128xf32> to vector<1x128xf32>
    %c0_22 = arith.constant 0 : index
    %c0_23 = arith.constant 0 : index
    %21 = vector.load %arg5[%c0_22, %c0_23] : memref<2x128xf32, #tpu.memory_space<vmem>>, vector<2x128xf32>
    %cst_24 = arith.constant dense<0.000000e+00> : vector<1x2xf32>
    %22 = tpu.matmul %18, %21, %cst_24 {dimension_numbers = #tpu.dot_dimension_numbers<[1], [1], [0], [0], [0, 0, 1, 0], [], []>} : vector<1x128xf32>, vector<2x128xf32>, vector<1x2xf32> -> vector<1x2xf32>
    %cst_25 = arith.constant dense<0.000000e+00> : vector<1x2xf32>
    %23 = tpu.matmul %20, %21, %cst_25 {dimension_numbers = #tpu.dot_dimension_numbers<[1], [1], [0], [0], [0, 0, 1, 0], [], []>} : vector<1x128xf32>, vector<2x128xf32>, vector<1x2xf32> -> vector<1x2xf32>
    %cst_26 = arith.constant 9.765625E-4 : f32
    %24 = vector.broadcast %cst_26 : f32 to vector<1x2xf32>
    %25 = arith.mulf %22, %24 : vector<1x2xf32>
    %cst_27 = arith.constant 9.765625E-4 : f32
    %26 = vector.broadcast %cst_27 : f32 to vector<1x2xf32>
    %27 = arith.mulf %23, %26 : vector<1x2xf32>
    %28 = arith.mulf %25, %25 : vector<1x2xf32>
    %29 = arith.subf %27, %28 : vector<1x2xf32>
    %cst_28 = arith.constant 0.000000e+00 : f32
    %30 = vector.broadcast %cst_28 : f32 to vector<1x2xf32>
    %31 = arith.maximumf %29, %30 : vector<1x2xf32>
    %cst_29 = arith.constant 9.99999974E-6 : f32
    %32 = vector.broadcast %cst_29 : f32 to vector<1x2xf32>
    %33 = arith.addf %31, %32 : vector<1x2xf32>
    %34 = math.rsqrt %33 : vector<1x2xf32>
    %cst_30 = arith.constant dense<0.000000e+00> : vector<1x128xf32>
    %35 = tpu.matmul %25, %21, %cst_30 {dimension_numbers = #tpu.dot_dimension_numbers<[1], [0], [0], [1], [0, 0, 1, 1], [], []>} : vector<1x2xf32>, vector<2x128xf32>, vector<1x128xf32> -> vector<1x128xf32>
    %cst_31 = arith.constant dense<0.000000e+00> : vector<1x128xf32>
    %36 = tpu.matmul %34, %21, %cst_31 {dimension_numbers = #tpu.dot_dimension_numbers<[1], [0], [0], [1], [0, 0, 1, 1], [], []>} : vector<1x2xf32>, vector<2x128xf32>, vector<1x128xf32> -> vector<1x128xf32>
    %c0_32 = arith.constant 0 : index
    %c0_33 = arith.constant 0 : index
    %37 = vector.load %arg3[%c0_32, %c0_33] : memref<1x128xf32, #tpu.memory_space<vmem>>, vector<1x128xf32>
    %38 = arith.mulf %36, %37 : vector<1x128xf32>
    %c0_34 = arith.constant 0 : index
    %c0_35 = arith.constant 0 : index
    %39 = vector.load %arg4[%c0_34, %c0_35] : memref<1x128xf32, #tpu.memory_space<vmem>>, vector<1x128xf32>
    %40 = arith.mulf %35, %38 : vector<1x128xf32>
    %41 = arith.subf %39, %40 : vector<1x128xf32>
    %42 = vector.shape_cast %38 : vector<1x128xf32> to vector<1x1x128xf32>
    %43 = vector.broadcast %42 : vector<1x1x128xf32> to vector<1x256x128xf32>
    %44 = arith.mulf %17, %43 : vector<1x256x128xf32>
    %45 = vector.shape_cast %41 : vector<1x128xf32> to vector<1x1x128xf32>
    %46 = vector.broadcast %45 : vector<1x1x128xf32> to vector<1x256x128xf32>
    %47 = arith.addf %44, %46 : vector<1x256x128xf32>
    %cst_36 = arith.constant 2.000000e+01 : f32
    %48 = vector.broadcast %cst_36 : f32 to vector<1x256x128xf32>
    %49 = arith.minimumf %47, %48 : vector<1x256x128xf32>
    %50 = math.exp %49 : vector<1x256x128xf32>
    %cst_37 = arith.constant 1.000000e+00 : f32
    %51 = vector.broadcast %cst_37 : f32 to vector<1x256x128xf32>
    %52 = arith.addf %51, %50 : vector<1x256x128xf32>
    %53 = arith.mulf %52, %52 : vector<1x256x128xf32>
    %cst_38 = arith.constant 1.000000e+00 : f32
    %54 = vector.broadcast %cst_38 : f32 to vector<1x256x128xf32>
    %55 = arith.subf %53, %54 : vector<1x256x128xf32>
    %56 = arith.mulf %47, %55 : vector<1x256x128xf32>
    %cst_39 = arith.constant 1.000000e+00 : f32
    %57 = vector.broadcast %cst_39 : f32 to vector<1x256x128xf32>
    %58 = arith.addf %53, %57 : vector<1x256x128xf32>
    %59 = tpu.reciprocal %58 {approx = true} : vector<1x256x128xf32> -> vector<1x256x128xf32>
    %60 = arith.mulf %56, %59 : vector<1x256x128xf32>
    %61 = vector.shape_cast %60 : vector<1x256x128xf32> to vector<1x16x16x128xf32>
    %62 = arith.truncf %61 : vector<1x16x16x128xf32> to vector<1x16x16x128xbf16>
    %c0_40 = arith.constant 0 : index
    %c0_41 = arith.constant 0 : index
    %c0_42 = arith.constant 0 : index
    %c0_43 = arith.constant 0 : index
    %63 = vector.load %arg6[%c0_40, %c0_41, %c0_42, %c0_43] : memref<1x16x16x128xbf16, #tpu.memory_space<vmem>>, vector<1x16x16x128xbf16>
    tpu.vector_store %arg6[%c0_40, %c0_41, %c0_42, %c0_43], %62 {strides = array<i32>} : memref<1x16x16x128xbf16, #tpu.memory_space<vmem>>, vector<1x16x16x128xbf16>,
    return
  }
  func.func @transform_0(%arg0: i32) -> (i32, i32, i32, i32) {
    %c0_i32 = arith.constant 0 : i32
    %c0_i32_0 = arith.constant 0 : i32
    %c0_i32_1 = arith.constant 0 : i32
    %c0_i32_2 = arith.constant 0 : i32
    return %arg0, %c0_i32, %c0_i32_0, %c0_i32_1 : i32, i32, i32, i32
  }
  func.func @transform_1(%arg0: i32) -> (i32, i32, i32) {
    %c0_i32 = arith.constant 0 : i32
    %c0_i32_0 = arith.constant 0 : i32
    %c0_i32_1 = arith.constant 0 : i32
    %c0_i32_2 = arith.constant 0 : i32
    return %c0_i32, %c0_i32_0, %c0_i32_1 : i32, i32, i32
  }
  func.func @transform_2(%arg0: i32) -> (i32, i32) {
    %c0_i32 = arith.constant 0 : i32
    %c0_i32_0 = arith.constant 0 : i32
    %c0_i32_1 = arith.constant 0 : i32
    return %c0_i32, %c0_i32_0 : i32, i32
  }
  func.func @transform_3(%arg0: i32) -> (i32, i32) {
    %c0_i32 = arith.constant 0 : i32
    %c0_i32_0 = arith.constant 0 : i32
    %c0_i32_1 = arith.constant 0 : i32
    return %c0_i32, %c0_i32_0 : i32, i32
  }
  func.func @transform_4(%arg0: i32) -> (i32, i32) {
    %c0_i32 = arith.constant 0 : i32
    %c0_i32_0 = arith.constant 0 : i32
    %c0_i32_1 = arith.constant 0 : i32
    return %c0_i32, %c0_i32_0 : i32, i32
  }
  func.func @transform_5(%arg0: i32) -> (i32, i32, i32, i32) {
    %c0_i32 = arith.constant 0 : i32
    %c0_i32_0 = arith.constant 0 : i32
    %c0_i32_1 = arith.constant 0 : i32
    %c0_i32_2 = arith.constant 0 : i32
    return %arg0, %c0_i32, %c0_i32_0, %c0_i32_1 : i32, i32, i32, i32
  }
}

</mosaic_0001>

<bundles_post_ra>
// kernel: tpu_custom_call.1
= control target key start
LH: loop header
LB: loop body
LE: loop exit
PB: predicated region body
PF: predicated region fallthrough
CT: control target
= control target key end

     0   :  { %10 = vsyncpa [#allocation3], 0  ;;  %s4527_s0 = inlined_call_operand.hbm [shape: bf16[2,18,16,128], index: 0, kind: input, shape index: {}]   ;;  %s4528_s1 = inlined_call_operand.hbm [shape: bf16[3,128,128], index: 1, kind: input, shape index: {}]   ;;  %s4529_s2 = inlined_call_operand.vmem [shape: f32[1,128], index: 2, kind: input, shape index: {}]   ;;  %s4530_s3 = inlined_call_operand.vmem [shape: f32[1,128], index: 3, kind: input, shape index: {}]   ;;  %s4531_s4 = inlined_call_operand.vmem [shape: f32[2,128], index: 4, kind: input, shape index: {}]   ;;  %s4532_s5 = inlined_call_operand.hbm [shape: bf16[2,16,16,128], index: 5, kind: output, shape index: {}]  }
   0x1   :  { %12 = vsyncpa [#allocation3 + $0x1], 0 }
   0x2   :  { %13 = vsyncpa [#allocation6], 0 }
   0x3   :  { %14 = vsyncpa [#allocation4], 0 }
   0x4   :  { %16 = vsyncpa [#allocation4 + $0x1], 0  ;;  %s3451_s18 = smov 0   ;;  %s3453_s19 = smov 0  }
   0x5   :  { %s3455_s20 = smov 0   ;;  %s3457_s21 = smov 0  }
   0x6 LB: > { %s3472_s22 = sadd.s32 4294967295, %s3410_s21   ;;  %s2415_s23 = sadd.s32 4294967294, %s3410_s21   ;;  %s3410_s21 = sphi %s3457_s21, %s4636_s21   ;;  %s3406_s20 = sphi %s3455_s20, %s4635_s20   ;;  %s3402_s19 = sphi %s3453_s19, %s4634_s19   ;;  %s3398_s18 = sphi %s3451_s18, %s4633_s18  }
   0x7   : > { %p42_p0 = scmp.ne.s32.totalorder %s3402_s19, %s3398_s18  ;;  %p4534_p1 = scmp.eq.s32.totalorder %s3472_s22, 0 }
   0x8   : > { %p156_p3 = scmp.eq.s32.totalorder %s2415_s23, 1  ;;  %p2416_p5 = scmp.ge.s32.totalorder %s3410_s21, 1 }
   0x9   : > { %p3481_p4 = por %p4534_p1, %p42_p0  ;;  %p163_p7 = scmp.lt.s32.totalorder %s3410_s21, 3 }
   0xa   : > { %p3486_p6 = por %p156_p3, %p42_p0  ;;  %s3412_s27 = smov [#allocation5]  }
   0xb   : > { %s4559_s24 = scalar_select %p3481_p4, 1, 0 }
   0xc   : > { %s4560_s25 = scalar_select %p3486_p6, 1, 0 }
   0xd   : > { %p3491_p8 = pnand %p2416_p5, %p163_p7  ;;  %s175_s28 = sshll.u32 %s3412_s27, 4  ;;  %s176_s28 = int_to_ptr.vmem [resolvable:$true] %s175_s28 }
   0xe   : > { %s3505_s30 = sadd.s32 1, %s3410_s21   ;;  %s29_s6 = sadd.s32 1, %s3406_s20 }
   0xf   : > { %s4561_s26 = scalar_select %p3491_p8, 1, 0 }
  0x10   : > { %p3031_p9 = pneg %p3491_p8  ;;  %s26_s7 = ssub.s32 %s3410_s21, %s3505_s30 }
  0x11   : > { %s3299_s8 = scalar_lea.vmem %s176_s28, 3072  ;;  %p3307_p5 = scmp.lt.s32.totalorder %s176_s28, %s176_s28 }
  0x12   : > { %p3500_p11 = pnand %p3031_p9, %p4534_p1  ;;  %p3300_p13 = scmp.ne.s32.totalorder %s176_s28, %s3299_s8 }
  0x13   : > { %p3308_p7 = scmp.lt.s32.totalorder %s3299_s8, %s3299_s8 }
  0x14   : > { %p3290_p12 = pneg %p3500_p11 }
  0x15   : > { %p3309_p10 = por %p3308_p7, %p3307_p5 }
  0x16   : > { %p3302_p0 = pnand %p3300_p13, %p3290_p12 }
  0x18   : > { %p3303_p3 = pneg %p3302_p0 }
  0x1a   : > { %p3310_p2 = pnand %p3309_p10, %p3303_p3 }
  0x1c   : > { %3313 = shalt.err (!%p3310_p2)
}
  0x1d   : > { %s4533_s9 = smov 64   ;;  %s3414_s10 = smov 4  }
  0x1e   : > { %3034 = dma.hbm_to_vmem [thread:$0]  (!%p3500_p11), %s4528_s1, 3072, %s176_s28, [#allocation6], %s4533_s9, %s4533_s9, %s3414_s10  }
  0x1f   : > { %p27_p2 = scmp.eq.s32.totalorder %s26_s7, 0  ;;  %p36_p9 = scmp.ne.s32.totalorder %s3406_s20, %s3402_s19 }
  0x20   : > { %p37_p10 = scmp.eq.s32.totalorder %s3410_s21, 0  ;;  %p3044_p12 = scmp.lt.s32.totalorder %s3410_s21, 2 }
  0x21   : > { %s3525_s13 = scalar_select %p27_p2, %s3406_s20, %s29_s6  }
  0x22   : > { %p38_p13 = por %p37_p10, %p36_p9  ;;  %p4563_p0 = scmp.eq.s32.totalorder %s3472_s22, 1 }
  0x23   : > { %s198_s15 = sand.u32 1, %s3406_s20   ;;  %s3021_s16 = smul.u32 2304, %s3410_s21 }
  0x24   : > { %p3529_p3 = por %p4563_p0, %p36_p9  ;;  %s3020_s17 = smul.u32 144, %s198_s15 }
  0x25   : > { %p3535_p5 = pnand %p3044_p12, %p38_p13  ;;  %s3542_s29 = scalar_lea.hbm %s4527_s0, %s3021_s16 }
  0x26   : > { %s4564_s14 = scalar_select %p3529_p3, 1, 0 }
  0x27   : > { %s202_s6 = scalar_lea.vmem [#allocation2], %s3020_s17  ;;  %s3546_s8 = scalar_lea.sflag [#allocation3], %s198_s15 }
  0x28   : > { %s209_s7 = sshll.u32 %s202_s6, 4  ;;  %s3314_s11 = scalar_lea.hbm %s3542_s29, 2304  ;;  %s3544_s7 = int_to_ptr.vmem [resolvable:$true] %s209_s7 }
  0x29   : > { %p3315_p11 = scmp.ne.s32.totalorder %s3542_s29, %s3314_s11  ;;  %p3316_p7 = pneg %p3535_p5 }
  0x2a   : > { %s3319_s16 = scalar_lea.hbm %s4527_s0, 4608  ;;  %p3320_p10 = scmp.lt.s32.totalorder %s3542_s29, %s4527_s0 }
  0x2b   : > { %p3317_p2 = pnand %p3316_p7, %p3315_p11  ;;  %p3321_p12 = scmp.lt.s32.totalorder %s3319_s16, %s3314_s11 }
  0x2d   : > { %p3318_p9 = pneg %p3317_p2  ;;  %p3322_p13 = por %p3321_p12, %p3320_p10 }
  0x2f   : > { %p3323_p0 = pnand %p3322_p13, %p3318_p9 }
  0x31   : > { %3326 = shalt.err (!%p3323_p0)
}
  0x32   : > { %s3327_s15 = scalar_lea.vmem %s3544_s7, 2304  ;;  %s3415_s17 = smov [#allocation2]  }
  0x33   : > { %p3328_p1 = scmp.ne.s32.totalorder %s3544_s7, %s3327_s15  ;;  %s3332_s6 = sshll.u32 %s3415_s17, 4  ;;  %s3333_s6 = int_to_ptr.vmem [resolvable:$false] %s3332_s6 }
  0x34   : > { %s3334_s12 = scalar_lea.vmem %s3333_s6, 4608  ;;  %p3335_p2 = scmp.lt.s32.totalorder %s3544_s7, %s3333_s6 }
  0x35   : > { %p3330_p6 = pnand %p3328_p1, %p3316_p7  ;;  %p3336_p3 = scmp.lt.s32.totalorder %s3334_s12, %s3327_s15 }
  0x37   : > { %p3331_p11 = pneg %p3330_p6  ;;  %p3337_p4 = por %p3336_p3, %p3335_p2 }
  0x39   : > { %p3338_p8 = pnand %p3337_p4, %p3331_p11 }
  0x3b   : > { %3341 = shalt.err (!%p3338_p8)
}
  0x3c   : > { %s4566_s9 = smov 64   ;;  %p4567_p1 = scmp.ne.s32.totalorder %s4561_s26, 0 }
  0x3d   : > { %3038 = dma.hbm_to_vmem [thread:$0]  (!%p3535_p5), %s3542_s29, 2304, %s3544_s7, %s3546_s8, %s4566_s9, %s4566_s9, %s3414_s10  }
  0x3e   : > { %221 = sbr.rel (%p4567_p1) target bundleno = 984 (0x3d8), region = 40 }
  0x43   : > { %s3573_s11 = sand.u32 1, %s3402_s19   ;;  %p4568_p4 = scmp.ne.s32.totalorder %s4559_s24, 0 }
  0x44   : > { %s3022_s27 = smul.u32 144, %s3573_s11  ;;  %s224_s16 = scalar_lea.sflag [#allocation3], %s3573_s11 }
  0x46   : > { %s3577_s28 = scalar_lea.vmem [#allocation2], %s3022_s27 }
  0x47   : > { %3385 = dma.done.wait (%p4568_p4), %s224_s16, 2304  }
  0x48   : > { %3387 = vsyncadd (%p4568_p4), %s224_s16, 4294964992  ;;  %p4569_p6 = scmp.eq.s32.totalorder %s3472_s22, 0 }
  0x4a   : > { %3389 = dma.done.wait (%p4569_p6), [#allocation6], 3072   ;;  %p4570_p8 = pmov %p4569_p6 }
  0x4b   : > { %v3086_v0 = vld [vmem:[#allocation5 + $0x78] sm:$0xff]   ;;  %v3088_v2 = vld [vmem:[#allocation5 + $0x70] sm:$0xff]   ;;  %v3090_v4 = vld [vmem:[#allocation5 + $0x68] sm:$0xff]   ;;  %vm3417_vm0 = vmmov 0   ;;  %vm1612_vm1 = vcmask 1041408   ;;  %vm1608_vm2 = vcmask 15360  }
  0x4c   : > { %3391 = vsyncadd (%p4570_p8), [#allocation6], 4294964224  ;;  %v3087_v1 = vld [vmem:[#allocation5 + $0x38] sm:$0xff]   ;;  %2840 = vmatprep.subr.bf16.mxu0 %v3086_v0  ;;  %v3089_v3 = vld [vmem:[#allocation5 + $0x30] sm:$0xff]   ;;  %s2422_s8 = sshll.u32 %s3573_s11, 7  ;;  %s2664_s17 = sshll.u32 %s3472_s22, 11 }
  0x4d   : > { %2888 = vmatprep.subr.bf16.mxu1 %v3087_v1  ;;  %2841 = vmatpush3.bf16.msra.mxu0 %v3086_v0  ;;  %v3091_v5 = vld [vmem:[#allocation5 + $0x28] sm:$0xff]   ;;  %v3092_v6 = vld [vmem:[#allocation5 + $0x60] sm:$0xff]   ;;  %v3094_v8 = vld [vmem:[#allocation5 + $0x58] sm:$0xff]   ;;  %s4404_s15 = scalar_lea.vmem [#allocation7], %s2422_s8  ;;  %s4480_s27 = scalar_lea.hbm %s4532_s5, %s2664_s17 }
  0x4e   : > { %2889 = vmatpush3.bf16.msra.mxu1 %v3087_v1  ;;  %2842 = vmatprep.subr.bf16.mxu0 %v3088_v2  ;;  %v3093_v7 = vld [vmem:[#allocation5 + $0x20] sm:$0xff]   ;;  %v3095_v9 = vld [vmem:[#allocation5 + $0x18] sm:$0xff]   ;;  %v3096_v10 = vld [vmem:[#allocation5 + $0x50] sm:$0xff]   ;;  %s2332_s6 = sshll.u32 %s4404_s15, 4  ;;  %s2319_s22 = scalar_lea.sflag [#allocation4], %s3573_s11  ;;  %s4482_s6 = int_to_ptr.vmem [resolvable:$true] %s2332_s6 }
  0x4f   : > { %2890 = vmatprep.subr.bf16.mxu1 %v3089_v3  ;;  %v3097_v11 = vld [vmem:[#allocation5 + $0x10] sm:$0xff]   ;;  %v3102_v12 = vld [vmem:[%s3577_s28 + $0x8] sm:$0xff]   ;;  %v3100_v16 = vld [vmem:[#allocation5 + $0x40] sm:$0xff]   ;;  %s3342_s16 = scalar_lea.vmem %s4482_s6, 2048  ;;  %p4630_p5 = scmp.ne.s32.totalorder %s4564_s14, 0 }
  0x50   : > { %v3103_v13 = vld [vmem:[%s3577_s28] sm:$0xff]   ;;  %2856 = vmatprep.mubr.bf16.mxu0 %v3102_v12  ;;  %v3098_v14 = vld [vmem:[#allocation5 + $0x48] sm:$0xff]   ;;  %v3106_v18 = vld [vmem:[#allocation5 + $0xb8] sm:$0xff]   ;;  %p3343_p3 = scmp.ne.s32.totalorder %s4482_s6, %s3342_s16 }
  0x51   : > { %2843 = vmatpush3.bf16.msra.mxu0 %v3088_v2  ;;  %2904 = vmatprep.mubr.bf16.mxu1 %v3103_v13  ;;  %v3099_v15 = vld [vmem:[#allocation5 + $0x8] sm:$0xff]   ;;  %v3101_v17 = vld [vmem:[#allocation5] sm:$0xff]   ;;  %v3111_v23 = vld [vmem:[#allocation5 + $0xb0] sm:$0xff]  }
  0x52   : > { %2891 = vmatpush3.bf16.msra.mxu1 %v3089_v3  ;;  %2844 = vmatprep.subr.bf16.mxu0 %v3090_v4  ;;  %v3104_v19 = vld [vmem:[%s3577_s28 + $0x10] sm:$0xff]   ;;  %v3105_v20 = vld [vmem:[%s3577_s28 + $0x8] sm:$0xff]   ;;  %v3107_v21 = vld [vmem:[%s3577_s28 + $0x18] sm:$0xff]   ;;  %p3344_p7 = pnand %p3343_p3, %p4630_p5 }
  0x53   : > { %2892 = vmatprep.subr.bf16.mxu1 %v3091_v5  ;;  %v3108_v22 = vld [vmem:[%s3577_s28 + $0x10] sm:$0xff]   ;;  %v3116_v24 = vld [vmem:[#allocation5 + $0xa8] sm:$0xff]   ;;  %v3109_v25 = vld [vmem:[%s3577_s28 + $0x20] sm:$0xff]  }
  0x54   : > { %v3110_v26 = vld [vmem:[%s3577_s28 + $0x18] sm:$0xff]   ;;  %v3112_v27 = vld [vmem:[%s3577_s28 + $0x28] sm:$0xff]   ;;  %v3113_v28 = vld [vmem:[%s3577_s28 + $0x20] sm:$0xff]   ;;  %p3345_p9 = pneg %p3344_p7 }
  0x55   : > { %2845 = vmatpush3.bf16.msra.mxu0 %v3090_v4  ;;  %v3121_v29 = vld [vmem:[#allocation5 + $0xa0] sm:$0xff]   ;;  %v3126_v31 = vld [vmem:[#allocation5 + $0x98] sm:$0xff]   ;;  %v3131_v35 = vld [vmem:[#allocation5 + $0x90] sm:$0xff]  }
  0x56   : > { %2893 = vmatpush3.bf16.msra.mxu1 %v3091_v5  ;;  %2846 = vmatprep.subr.bf16.mxu0 %v3092_v6  ;;  %v3114_v30 = vld [vmem:[%s3577_s28 + $0x30] sm:$0xff]   ;;  %v3115_v32 = vld [vmem:[%s3577_s28 + $0x28] sm:$0xff]   ;;  %v3117_v33 = vld [vmem:[%s3577_s28 + $0x38] sm:$0xff]  }
  0x57   : > { %2894 = vmatprep.subr.bf16.mxu1 %v3093_v7  ;;  %v3118_v34 = vld [vmem:[%s3577_s28 + $0x30] sm:$0xff]   ;;  %v3119_v36 = vld [vmem:[%s3577_s28 + $0x40] sm:$0xff]   ;;  %v3136_v37 = vld [vmem:[#allocation5 + $0x88] sm:$0xff]  }
  0x58   : > { %v3120_v38 = vld [vmem:[%s3577_s28 + $0x38] sm:$0xff]   ;;  %v3122_v39 = vld [vmem:[%s3577_s28 + $0x48] sm:$0xff]   ;;  %v3123_v40 = vld [vmem:[%s3577_s28 + $0x40] sm:$0xff]  }
  0x59   : > { %2847 = vmatpush3.bf16.msra.mxu0 %v3092_v6  ;;  %v3141_v41 = vld [vmem:[#allocation5 + $0x80] sm:$0xff]   ;;  %v3125_v43 = vld [vmem:[%s3577_s28 + $0x48] sm:$0xff]   ;;  %v3127_v44 = vld [vmem:[%s3577_s28 + $0x58] sm:$0xff]  }
  0x5a   : > { %2895 = vmatpush3.bf16.msra.mxu1 %v3093_v7  ;;  %2848 = vmatprep.subr.bf16.mxu0 %v3094_v8  ;;  %v3124_v42 = vld [vmem:[%s3577_s28 + $0x50] sm:$0xff]   ;;  %v3129_v46 = vld [vmem:[%s3577_s28 + $0x60] sm:$0xff]   ;;  %v3130_v47 = vld [vmem:[%s3577_s28 + $0x58] sm:$0xff]  }
  0x5b   : > { %2896 = vmatprep.subr.bf16.mxu1 %v3095_v9  ;;  %v3128_v45 = vld [vmem:[%s3577_s28 + $0x50] sm:$0xff]   ;;  %v3132_v48 = vld [vmem:[%s3577_s28 + $0x68] sm:$0xff]   ;;  %v3133_v49 = vld [vmem:[%s3577_s28 + $0x60] sm:$0xff]  }
  0x5c   : > { %v3134_v50 = vld [vmem:[%s3577_s28 + $0x70] sm:$0xff]   ;;  %v3135_v51 = vld [vmem:[%s3577_s28 + $0x68] sm:$0xff]   ;;  %v3137_v52 = vld [vmem:[%s3577_s28 + $0x78] sm:$0xff]  }
  0x5d   : > { %2849 = vmatpush3.bf16.msra.mxu0 %v3094_v8  ;;  %v3138_v53 = vld [vmem:[%s3577_s28 + $0x70] sm:$0xff]   ;;  %v3139_v54 = vld [vmem:[%s3577_s28 + $0x80] sm:$0xff]   ;;  %v3140_v55 = vld [vmem:[%s3577_s28 + $0x78] sm:$0xff]  }
  0x5e   : > { %2897 = vmatpush3.bf16.msra.mxu1 %v3095_v9  ;;  %2850 = vmatprep.subr.bf16.mxu0 %v3096_v10  ;;  %v3142_v56 = vld [vmem:[%s3577_s28 + $0x10] sm:$0xff]   ;;  %v3143_v57 = vld [vmem:[%s3577_s28 + $0x60] sm:$0xff]   ;;  %v3144_v58 = vld [vmem:[%s3577_s28 + $0x18] sm:$0xff]   ;;  %v4538_v9 = vmov 0.0  }
  0x5f   : > { %2898 = vmatprep.subr.bf16.mxu1 %v3097_v11  ;;  %v3145_v59 = vld [vmem:[%s3577_s28 + $0x68] sm:$0xff]   ;;  %v3146_v60 = vld [vmem:[%s3577_s28 + $0x20] sm:$0xff]   ;;  %v3147_v61 = vld [vmem:[%s3577_s28 + $0x70] sm:$0xff]  }
  0x60   : > { %v3148_v62 = vld [vmem:[%s3577_s28 + $0x28] sm:$0xff]   ;;  %v3149_v63 = vld [vmem:[%s3577_s28 + $0x78] sm:$0xff]   ;;  %v3150_v0 = vld [vmem:[%s3577_s28 + $0x30] sm:$0xff]  }
  0x61   : > { %2851 = vmatpush3.bf16.msra.mxu0 %v3096_v10  ;;  %v3151_v1 = vld [vmem:[%s3577_s28 + $0x80] sm:$0xff]   ;;  %v3152_v2 = vld [vmem:[%s3577_s28 + $0x38] sm:$0xff]   ;;  %v3153_v3 = vld [vmem:[%s3577_s28 + $0x88] sm:$0xff]  }
  0x62   : > { %2899 = vmatpush3.bf16.msra.mxu1 %v3097_v11  ;;  %2852 = vmatprep.subr.bf16.mxu0 %v3098_v14  ;;  %v3154_v4 = vld [vmem:[%s3577_s28 + $0x40] sm:$0xff]   ;;  %v3155_v5 = vld [vmem:[%s3577_s28 + $0x48] sm:$0xff]   ;;  %v3156_v6 = vld [vmem:[%s3577_s28 + $0x50] sm:$0xff]  }
  0x63   : > { %2900 = vmatprep.subr.bf16.mxu1 %v3099_v15  ;;  %v3157_v7 = vld [vmem:[%s3577_s28 + $0x58] sm:$0xff]   ;;  %v3638_v8 = vld [vmem:[%s4531_s4] sm:$0x3]  ;;  %s3418_s28 = smov [#allocation7]  }
  0x64   : > { %4571 = vst [vmem:[#allocation11_spill] sm:$0xff] %v3638_v8  ;;  %s3346_s24 = sshll.u32 %s3418_s28, 4  ;;  %s3347_s24 = int_to_ptr.vmem [resolvable:$false] %s3346_s24 }
  0x65   : > { %2853 = vmatpush3.bf16.msra.mxu0 %v3098_v14  ;;  %s3348_s26 = scalar_lea.vmem %s3347_s24, 4096  ;;  %p3349_p10 = scmp.lt.s32.totalorder %s4482_s6, %s3347_s24 }
  0x66   : > { %2901 = vmatpush3.bf16.msra.mxu1 %v3099_v15  ;;  %2854 = vmatprep.subr.bf16.mxu0 %v3100_v16  ;;  %p3350_p12 = scmp.lt.s32.totalorder %s3348_s26, %s3342_s16 }
  0x67   : > { %2902 = vmatprep.subr.bf16.mxu1 %v3101_v17 }
  0x68   : > { %p3351_p13 = por %p3350_p12, %p3349_p10 }
  0x69   : > { %2855 = vmatpush3.bf16.msra.mxu0 %v3100_v16 }
  0x6a   : > { %2903 = vmatpush3.bf16.msra.mxu1 %v3101_v17  ;;  %2936 = vmatprep.subr.bf16.mxu0 %v3106_v18  ;;  %p3352_p0 = pnand %p3351_p13, %p3345_p9 }
  0x6b   : > { %3004 = vmatprep.subr.bf16.mxu1 %v3106_v18 }
  0x6c   : > { %2857 = vmatmul.mubr.bf16.vlgmr.msra.gmra.mxu0 %v3104_v19 }
  0x6d   : > { %2905 = vmatmul.mubr.bf16.vlgmr.msra.gmra.mxu1 %v3105_v20  ;;  %2937 = vmatpush3.bf16.msra.mxu0 %v3106_v18 }
  0x6e   : > { %2860 = vmatprep.mubr.bf16.mxu0 %v3107_v21  ;;  %2908 = vmatprep.mubr.bf16.mxu1 %v3108_v22 }
  0x6f   : > { %2938 = vmatprep.subr.bf16.mxu0 %v3111_v23  ;;  %3012 = vmatpush3.bf16.msra.mxu1 %v3106_v18 }
  0x70   : > { %3005 = vmatprep.subr.bf16.mxu1 %v3111_v23 }
  0x71   : > { %2939 = vmatpush3.bf16.msra.mxu0 %v3111_v23 }
  0x72   : > { %2940 = vmatprep.subr.bf16.mxu0 %v3116_v24 }
  0x73   : > { %3013 = vmatpush3.bf16.msra.mxu1 %v3111_v23 }
  0x74   : > { %2861 = vmatmul.mubr.bf16.gmra.mxu0 %v3109_v25  ;;  %3006 = vmatprep.subr.bf16.mxu1 %v3116_v24 }
  0x75   : > { %2909 = vmatmul.mubr.bf16.gmra.mxu1 %v3110_v26  ;;  %2864 = vmatprep.mubr.bf16.mxu0 %v3112_v27 }
  0x76   : > { %2912 = vmatprep.mubr.bf16.mxu1 %v3113_v28  ;;  %2941 = vmatpush3.bf16.msra.mxu0 %v3116_v24 }
  0x77   : > { %2942 = vmatprep.subr.bf16.mxu0 %v3121_v29  ;;  %3014 = vmatpush3.bf16.msra.mxu1 %v3116_v24 }
  0x78   : > { %3007 = vmatprep.subr.bf16.mxu1 %v3121_v29 }
  0x7a   : > { %2943 = vmatpush3.bf16.msra.mxu0 %v3121_v29 }
  0x7b   : > { %2944 = vmatprep.subr.bf16.mxu0 %v3126_v31  ;;  %3015 = vmatpush3.bf16.msra.mxu1 %v3121_v29 }
  0x7c   : > { %2865 = vmatmul.mubr.bf16.gmra.mxu0 %v3114_v30  ;;  %3008 = vmatprep.subr.bf16.mxu1 %v3126_v31 }
  0x7d   : > { %2913 = vmatmul.mubr.bf16.gmra.mxu1 %v3115_v32  ;;  %2868 = vmatprep.mubr.bf16.mxu0 %v3117_v33 }
  0x7e   : > { %2916 = vmatprep.mubr.bf16.mxu1 %v3118_v34  ;;  %2945 = vmatpush3.bf16.msra.mxu0 %v3126_v31 }
  0x7f   : > { %2946 = vmatprep.subr.bf16.mxu0 %v3131_v35  ;;  %3016 = vmatpush3.bf16.msra.mxu1 %v3126_v31 }
  0x80   : > { %3009 = vmatprep.subr.bf16.mxu1 %v3131_v35 }
  0x82   : > { %2947 = vmatpush3.bf16.msra.mxu0 %v3131_v35 }
  0x83   : > { %2948 = vmatprep.subr.bf16.mxu0 %v3136_v37  ;;  %3017 = vmatpush3.bf16.msra.mxu1 %v3131_v35 }
  0x84   : > { %2869 = vmatmul.mubr.bf16.gmra.mxu0 %v3119_v36  ;;  %3010 = vmatprep.subr.bf16.mxu1 %v3136_v37 }
  0x85   : > { %2917 = vmatmul.mubr.bf16.gmra.mxu1 %v3120_v38  ;;  %2872 = vmatprep.mubr.bf16.mxu0 %v3122_v39 }
  0x86   : > { %2920 = vmatprep.mubr.bf16.mxu1 %v3123_v40  ;;  %2949 = vmatpush3.bf16.msra.mxu0 %v3136_v37 }
  0x87   : > { %2950 = vmatprep.subr.bf16.mxu0 %v3141_v41  ;;  %3018 = vmatpush3.bf16.msra.mxu1 %v3136_v37 }
  0x88   : > { %3011 = vmatprep.subr.bf16.mxu1 %v3141_v41 }
  0x8a   : > { %2951 = vmatpush3.bf16.msra.mxu0 %v3141_v41 }
  0x8b   : > { %3019 = vmatpush3.bf16.msra.mxu1 %v3141_v41 }
  0x8c   : > { %2873 = vmatmul.mubr.bf16.gmra.mxu0 %v3124_v42  ;;  %2984 = vmatprep.subr.mxu1 %v4538_v9 }
  0x8d   : > { %2921 = vmatmul.mubr.bf16.gmra.mxu1 %v3125_v43  ;;  %2876 = vmatprep.mubr.bf16.mxu0 %v3127_v44 }
  0x8e   : > { %2924 = vmatprep.mubr.bf16.mxu1 %v3128_v45 }
  0x94   : > { %2877 = vmatmul.mubr.bf16.gmra.mxu0 %v3129_v46 }
  0x95   : > { %2925 = vmatmul.mubr.bf16.gmra.mxu1 %v3130_v47  ;;  %2880 = vmatprep.mubr.bf16.mxu0 %v3132_v48 }
  0x96   : > { %2928 = vmatprep.mubr.bf16.mxu1 %v3133_v49 }
  0x9c   : > { %2881 = vmatmul.mubr.bf16.gmra.mxu0 %v3134_v50 }
  0x9d   : > { %2929 = vmatmul.mubr.bf16.gmra.mxu1 %v3135_v51  ;;  %2884 = vmatprep.mubr.bf16.mxu0 %v3137_v52 }
  0x9e   : > { %2932 = vmatprep.mubr.bf16.mxu1 %v3138_v53 }
  0xa4   : > { %2885 = vmatmul.mubr.bf16.gmra.mxu0 %v3139_v54 }
  0xa5   : > { %2933 = vmatmul.mubr.bf16.gmra.mxu1 %v3140_v55  ;;  %2952 = vmatprep.mubr.bf16.mxu0 %v3142_v56 }
  0xa6   : > { %2972 = vmatprep.mubr.bf16.mxu1 %v3143_v57 }
  0xac   : > { %2953 = vmatmul.mubr.bf16.vlgmr.msra.gmra.mxu0 %v3144_v58 }
  0xad   : > { %2973 = vmatmul.mubr.bf16.vlgmr.msra.gmra.mxu1 %v3145_v59  ;;  %2956 = vmatprep.mubr.bf16.mxu0 %v3146_v60 }
  0xae   : > { %2976 = vmatprep.mubr.bf16.mxu1 %v3147_v61  ;;  %2985 = vmatpush3.xpose.msra.mxu1 %v3638_v8 }
  0xaf   : > { %2989 = vmatprep.subr.mxu1 %v4538_v9 }
  0xb4   : > { %2957 = vmatmul.mubr.bf16.gmra.mxu0 %v3148_v62 }
  0xb5   : > { %2977 = vmatmul.mubr.bf16.gmra.mxu1 %v3149_v63  ;;  %2960 = vmatprep.mubr.bf16.mxu0 %v3150_v0 }
  0xb6   : > { %2980 = vmatprep.mubr.bf16.mxu1 %v3151_v1 }
  0xbc   : > { %2961 = vmatmul.mubr.bf16.gmra.mxu0 %v3152_v2 }
  0xbd   : > { %2981 = vmatmul.mubr.bf16.gmra.mxu1 %v3153_v3  ;;  %2964 = vmatprep.mubr.bf16.mxu0 %v3154_v4 }
  0xbe   : > { %2986 = vmatprep.mubr.msk.f32.mxu1 %vm3417_vm0, %v4538_v9 }
  0xc4   : > { %2965 = vmatmul.mubr.bf16.gmra.mxu0 %v3155_v5 }
  0xc5   : > { %2968 = vmatprep.mubr.bf16.mxu0 %v3156_v6 }
  0xcc   : > { %2969 = vmatmul.mubr.bf16.gmra.mxu0 %v3157_v7 }
 0x12c   : > { %v3644_v10 = vpop.f32.mrf.mxu0 }
 0x12d   : > { %v3647_v11 = vpop.f32.mrf.mxu1 }
 0x12e   : > { %v535_v12 = vpop.f32.mrf.mxu0 }
 0x12f   : > { %v840_v13 = vpop.f32.mrf.mxu1 }
 0x130   : > { %v3649_v14 = vpop.f32.mrf.mxu0 }
 0x131   : > { %v3651_v15 = vpop.f32.mrf.mxu1 }
 0x132   : > { %v538_v16 = vpop.f32.mrf.mxu0 }
 0x133   : > { %v843_v17 = vpop.f32.mrf.mxu1 }
 0x134   : > { %v3653_v18 = vpop.f32.mrf.mxu0 }
 0x135   : > { %v3655_v19 = vpop.f32.mrf.mxu1 }
 0x136   : > { %v3657_v20 = vpop.f32.mrf.mxu0 }
 0x137   : > { %v3659_v21 = vpop.f32.mrf.mxu1 }
 0x138   : > { %v3661_v22 = vpop.f32.mrf.mxu0 }
 0x139   : > { %v3663_v23 = vpop.f32.mrf.mxu1 }
 0x13a   : > { %v3665_v24 = vpop.f32.mrf.mxu0 }
 0x13b   : > { %v3667_v25 = vpop.f32.mrf.mxu1 }
 0x13c   : > { %v3669_v26 = vpop.f32.mrf.mxu0 }
 0x13d   : > { %v3671_v27 = vpop.f32.mrf.mxu1 }
 0x13e   : > { %v3673_v28 = vpop.f32.mrf.mxu0 }
 0x13f   : > { %v3675_v29 = vpop.f32.mrf.mxu1 }
 0x140   : > { %v3677_v30 = vpop.f32.mrf.mxu0 }
 0x141   : > { %v3679_v31 = vpop.f32.mrf.mxu1 }
 0x142   : > { %v3681_v32 = vpop.f32.mrf.mxu0 }
 0x143   : > { %v3683_v33 = vpop.f32.mrf.mxu1 }
 0x144   : > { %v3685_v34 = vpop.f32.mrf.mxu0 }
 0x145   : > { %v3687_v35 = vpop.f32.mrf.mxu1 }
 0x146   : > { %v3689_v36 = vpop.f32.mrf.mxu0 }
 0x147   : > { %v3691_v37 = vpop.f32.mrf.mxu1 }
 0x148   : > { %v3693_v38 = vpop.f32.mrf.mxu0 }
 0x149   : > { %v3695_v39 = vpop.f32.mrf.mxu1 }
 0x14a   : > { %v3697_v40 = vpop.f32.mrf.mxu0 }
 0x14b   : > { %v3699_v41 = vpop.f32.mrf.mxu1 }
 0x14c   : > { %v3701_v42 = vpop.f32.mrf.mxu0 }
 0x14d   : > { %v3703_v43 = vpop.f32.mrf.mxu1 }
 0x14e   : > { %v3705_v44 = vpop.f32.mrf.mxu0 }
 0x14f   : > { %v3707_v45 = vpop.f32.mrf.mxu1 }
 0x150   : > { %v3709_v46 = vpop.f32.mrf.mxu0 }
 0x151   : > { %v3711_v47 = vpop.f32.mrf.mxu1 }
 0x152   : > { %v3713_v48 = vpop.f32.mrf.mxu0 }
 0x153   : > { %v3715_v49 = vpop.f32.mrf.mxu1 }
 0x154   : > { %v3717_v50 = vpop.f32.mrf.mxu0 }
 0x155   : > { %v3719_v51 = vpop.f32.mrf.mxu1 }
 0x156   : > { %v3721_v52 = vpop.f32.mrf.mxu0 }
 0x157   : > { %v3723_v53 = vpop.f32.mrf.mxu1 }
 0x158   : > { %v3725_v54 = vpop.f32.mrf.mxu0 }
 0x159   : > { %v3727_v55 = vpop.f32.mrf.mxu1 }
 0x15a   : > { %v3729_v56 = vpop.f32.mrf.mxu0 }
 0x15b   : > { %v3731_v57 = vpop.f32.mrf.mxu1 }
 0x15c   : > { %v3733_v58 = vpop.f32.mrf.mxu0 }
 0x15d   : > { %4572 = vst [vmem:[#allocation12_spill] sm:$0xff] %v3733_v58  ;;  %v3735_v59 = vpop.f32.mrf.mxu1 }
 0x15e   : > { %4573 = vst [vmem:[#allocation13_spill] sm:$0xff] %v3735_v59  ;;  %v3737_v60 = vpop.f32.mrf.mxu0  ;;  %v849_v59 = vadd.f32 %v3647_v11, %v3644_v10 }
 0x15f   : > { %v3739_v61 = vpop.f32.mrf.mxu1 }
 0x160   : > { %v3741_v62 = vpop.f32.mrf.mxu0 }
 0x161   : > { %4574 = vst [vmem:[#allocation14_spill] sm:$0xff] %v3741_v62  ;;  %v3743_v63 = vpop.f32.mrf.mxu1  ;;  %v841_v62 = vadd.f32 %v840_v13, %v535_v12  ;;  %v857_v12 = vadd.f32 %v3659_v21, %v3657_v20 }
 0x162   : > { %4575 = vst [vmem:[#allocation15_spill] sm:$0xff] %v3743_v63  ;;  %v3745_v0 = vpop.f32.mrf.mxu0 }
 0x163   : > { %v3749_v2 = vpop.f32.mrf.mxu1 }
 0x164   : > { %v3747_v1 = vpop.f32.mrf.mxu0  ;;  %4577 = vst [vmem:[#allocation17_spill] sm:$0xff] %v3749_v2 }
 0x165   : > { %4576 = vst [vmem:[#allocation16_spill] sm:$0xff] %v3747_v1  ;;  %v3755_v5 = vpop.f32.mrf.mxu1  ;;  %v844_v1 = vadd.f32 %v843_v17, %v538_v16 }
 0x166   : > { %v3751_v3 = vpop.f32.mrf.mxu0  ;;  %4580 = vst [vmem:[#allocation20_spill] sm:$0xff] %v3755_v5 }
 0x167   : > { %4578 = vst [vmem:[#allocation18_spill] sm:$0xff] %v3751_v3  ;;  %v3759_v9 = vpop.f32.mrf.mxu1 }
 0x168   : > { %v3753_v4 = vpop.f32.mrf.mxu0 }
 0x169   : > { %4579 = vst [vmem:[#allocation19_spill] sm:$0xff] %v3753_v4  ;;  %v3765_v2 = vpop.f32.mrf.mxu1  ;;  %v852_v4 = vadd.f32 %v3651_v15, %v3649_v14 }
 0x16a   : > { %v3757_v6 = vpop.f32.mrf.mxu0 }
 0x16b   : > { %4581 = vst [vmem:[#allocation21_spill] sm:$0xff] %v3757_v6  ;;  %v3783_v14 = vpop.f32.mrf.mxu1 }
 0x16c   : > { %v2954_v7 = vpop.f32.mrf.mxu0 }
 0x16d   : > { %v3769_v5 = vadd.f32 %v2954_v7, %v849_v59 }
 0x16e   : > { %v1195_v8 = vpop.f32.mrf.mxu0 }
 0x16f   : > { %v3763_v58 = vadd.f32 %v1195_v8, %v841_v62  ;;  %v1393_v17 = vmul.f32 %v3769_v5, %v3769_v5  ;;  %v865_v62 = vadd.f32 %v3655_v19, %v3653_v18 }
 0x170   : > { %v2955_v63 = vpop.f32.mrf.mxu0 }
 0x171   : > { %v1391_v10 = vmul.f32 %v3763_v58, %v3763_v58  ;;  %v3777_v11 = vadd.f32 %v2955_v63, %v852_v4 }
 0x172   : > { %v1198_v3 = vpop.f32.mrf.mxu0 }
 0x173   : > { %v3771_v6 = vadd.f32 %v1198_v3, %v844_v1  ;;  %v860_v1 = vadd.f32 %v3667_v25, %v3665_v24  ;;  %v1394_v3 = vmul.f32 %v3777_v11, %v3777_v11 }
 0x174   : > { %v2958_v13 = vpop.f32.mrf.mxu0 }
 0x175   : > { %4582 = vst [vmem:[#allocation22_spill] sm:$0xff] %v3771_v6  ;;  %v1354_v8 = vadd.f32 %v3771_v6, %v3763_v58  ;;  %v1392_v16 = vmul.f32 %v3771_v6, %v3771_v6  ;;  %v868_v6 = vadd.f32 %v3663_v23, %v3661_v22 }
 0x176   : > { %v1211_v15 = vpop.f32.mrf.mxu0 }
 0x177   : > { %v1355_v20 = vadd.f32 %v1354_v8, %v3769_v5  ;;  %v1423_v21 = vadd.f32 %v1392_v16, %v1391_v10  ;;  %v3788_v59 = vadd.f32 %v1211_v15, %v857_v12  ;;  %v3799_v8 = vpop.f32.mrf.mxu1  ;;  %v3801_v12 = vadd.f32 %v2958_v13, %v865_v62 }
 0x178   : > { %v2959_v63 = vpop.f32.mrf.mxu0  ;;  %v873_v16 = vadd.f32 %v3675_v29, %v3673_v28  ;;  %v881_v28 = vadd.f32 %v3671_v27, %v3669_v26 }
 0x179   : > { %v1424_v4 = vadd.f32 %v1423_v21, %v1393_v17  ;;  %v1356_v7 = vadd.f32 %v1355_v20, %v3777_v11  ;;  %v1395_v19 = vmul.f32 %v3788_v59, %v3788_v59  ;;  %v3810_v20 = vadd.f32 %v2959_v63, %v868_v6  ;;  %v3815_v13 = vpop.f32.mrf.mxu1 }
 0x17a   : > { %v1214_v10 = vpop.f32.mrf.mxu0  ;;  %v1397_v62 = vmul.f32 %v3801_v12, %v3801_v12  ;;  %v876_v6 = vadd.f32 %v3683_v33, %v3681_v32 }
 0x17b   : > { %v1357_v18 = vadd.f32 %v1356_v7, %v3788_v59  ;;  %v1425_v24 = vadd.f32 %v1424_v4, %v1394_v3  ;;  %v3806_v25 = vadd.f32 %v1214_v10, %v860_v1  ;;  %v1398_v63 = vmul.f32 %v3810_v20, %v3810_v20 }
 0x17c   : > { %v2962_v15 = vpop.f32.mrf.mxu0 }
 0x17d   : > { %v1426_v17 = vadd.f32 %v1425_v24, %v1395_v19  ;;  %v1358_v22 = vadd.f32 %v1357_v18, %v3806_v25  ;;  %v1396_v23 = vmul.f32 %v3806_v25, %v3806_v25  ;;  %v884_v18 = vadd.f32 %v3679_v31, %v3677_v30  ;;  %v3831_v19 = vpop.f32.mrf.mxu1 }
 0x17e   : > { %v1227_v21 = vpop.f32.mrf.mxu0  ;;  %v3833_v24 = vadd.f32 %v2962_v15, %v881_v28 }
 0x17f   : > { %v1359_v1 = vadd.f32 %v1358_v22, %v3801_v12  ;;  %v1427_v3 = vadd.f32 %v1426_v17, %v1396_v23  ;;  %v3820_v4 = vadd.f32 %v1227_v21, %v873_v16  ;;  %v889_v17 = vadd.f32 %v3691_v37, %v3689_v36  ;;  %v1278_v15 = vpop.f32.mrf.mxu1 }
 0x180   : > { %v2963_v29 = vpop.f32.mrf.mxu0  ;;  %v897_v36 = vadd.f32 %v3687_v35, %v3685_v34 }
 0x181   : > { %v1428_v7 = vadd.f32 %v1427_v3, %v1397_v62  ;;  %v1360_v10 = vadd.f32 %v1359_v1, %v3810_v20  ;;  %v1399_v27 = vmul.f32 %v3820_v4, %v3820_v4  ;;  %v3842_v21 = vadd.f32 %v2963_v29, %v884_v18 }
 0x182   : > { %v1230_v16 = vpop.f32.mrf.mxu0  ;;  %v1401_v1 = vmul.f32 %v3833_v24, %v3833_v24  ;;  %v892_v29 = vadd.f32 %v3699_v41, %v3697_v40  ;;  %v900_v18 = vadd.f32 %v3695_v39, %v3693_v38 }
 0x183   : > { %v1361_v26 = vadd.f32 %v1360_v10, %v3820_v4  ;;  %v1429_v32 = vadd.f32 %v1428_v7, %v1398_v63  ;;  %v3838_v33 = vadd.f32 %v1230_v16, %v876_v6  ;;  %v1402_v63 = vmul.f32 %v3842_v21, %v3842_v21  ;;  %v3861_v16 = vpop.f32.mrf.mxu1 }
 0x184   : > { %v2966_v22 = vpop.f32.mrf.mxu0 }
 0x185   : > { %v1430_v23 = vadd.f32 %v1429_v32, %v1399_v27  ;;  %v1362_v30 = vadd.f32 %v1361_v26, %v3838_v33  ;;  %v1400_v31 = vmul.f32 %v3838_v33, %v3838_v33  ;;  %v3863_v26 = vadd.f32 %v2966_v22, %v897_v36  ;;  %v1291_v22 = vpop.f32.mrf.mxu1 }
 0x186   : > { %v1243_v62 = vpop.f32.mrf.mxu0  ;;  %v905_v32 = vadd.f32 %v3707_v45, %v3705_v44  ;;  %v913_v44 = vadd.f32 %v3703_v43, %v3701_v42  ;;  %v908_v36 = vadd.f32 %v3715_v49, %v3713_v48  ;;  %v921_v49 = vadd.f32 %v3723_v53, %v3721_v52 }
 0x187   : > { %v1363_v3 = vadd.f32 %v1362_v30, %v3833_v24  ;;  %v1431_v28 = vadd.f32 %v1430_v23, %v1400_v31  ;;  %v3850_v6 = vadd.f32 %v1243_v62, %v889_v17  ;;  %v1405_v62 = vmul.f32 %v3863_v26, %v3863_v26 }
 0x188   : > { %v2967_v37 = vpop.f32.mrf.mxu0 }
 0x189   : > { %v1432_v7 = vadd.f32 %v1431_v28, %v1401_v1  ;;  %v1364_v10 = vadd.f32 %v1363_v3, %v3842_v21  ;;  %v1403_v35 = vmul.f32 %v3850_v6, %v3850_v6  ;;  %v3872_v30 = vadd.f32 %v2967_v37, %v900_v18 }
 0x18a   : > { %v1246_v27 = vpop.f32.mrf.mxu0 }
 0x18b   : > { %v1365_v34 = vadd.f32 %v1364_v10, %v3850_v6  ;;  %v1433_v40 = vadd.f32 %v1432_v7, %v1402_v63  ;;  %v3868_v41 = vadd.f32 %v1246_v27, %v892_v29  ;;  %v1406_v37 = vmul.f32 %v3872_v30, %v3872_v30  ;;  %v2979_v10 = vpop.f32.mrf.mxu1 }
 0x18c   : > { %v2970_v17 = vpop.f32.mrf.mxu0  ;;  %v916_v7 = vadd.f32 %v3711_v47, %v3709_v46 }
 0x18d   : > { %v1434_v23 = vadd.f32 %v1433_v40, %v1403_v35  ;;  %v1366_v38 = vadd.f32 %v1365_v34, %v3868_v41  ;;  %v1404_v39 = vmul.f32 %v3868_v41, %v3868_v41  ;;  %v3891_v18 = vadd.f32 %v2970_v17, %v913_v44  ;;  %v1294_v17 = vpop.f32.mrf.mxu1 }
 0x18e   : > { %v1259_v31 = vpop.f32.mrf.mxu0 }
 0x18f   : > { %v1367_v1 = vadd.f32 %v1366_v38, %v3863_v26  ;;  %v1435_v3 = vadd.f32 %v1434_v23, %v1404_v39  ;;  %v3880_v28 = vadd.f32 %v1259_v31, %v905_v32  ;;  %v924_v32 = vadd.f32 %v3731_v57, %v3729_v56 }
 0x190   : > { %v2971_v45 = vpop.f32.mrf.mxu0  ;;  %v3908_v23 = vadd.f32 %v3815_v13, %v921_v49  ;;  %v1409_v38 = vmul.f32 %v3891_v18, %v3891_v18  ;;  %v929_v39 = vadd.f32 %v3719_v51, %v3717_v50  ;;  %v932_v13 = vadd.f32 %v3727_v55, %v3725_v54 }
 0x191   : > { %v1436_v29 = vadd.f32 %v1435_v3, %v1405_v62  ;;  %v1368_v63 = vadd.f32 %v1367_v1, %v3872_v30  ;;  %v1407_v42 = vmul.f32 %v3880_v28, %v3880_v28  ;;  %v3900_v40 = vadd.f32 %v2971_v45, %v916_v7  ;;  %v2982_v1 = vpop.f32.mrf.mxu1 }
 0x192   : > { %v1262_v27 = vpop.f32.mrf.mxu0  ;;  %v3915_v31 = vadd.f32 %v1278_v15, %v924_v32  ;;  %v3923_v3 = vadd.f32 %v3799_v8, %v929_v39  ;;  %v1411_v44 = vmul.f32 %v3908_v23, %v3908_v23  ;;  %v937_v15 = vadd.f32 %v3739_v61, %v3737_v60  ;;  %v4583_v8 = vld [vmem:[#allocation17_spill] sm:$0xff]  ;;  %v4588_v39 = vld [vmem:[#allocation18_spill] sm:$0xff] }
 0x193   : > { %v1369_v34 = vadd.f32 %v1368_v63, %v3880_v28  ;;  %v1437_v43 = vadd.f32 %v1436_v29, %v1406_v37  ;;  %v3896_v48 = vadd.f32 %v1262_v27, %v908_v36  ;;  %v1410_v62 = vmul.f32 %v3900_v40, %v3900_v40  ;;  %v1307_v29 = vpop.f32.mrf.mxu1  ;;  %v4585_v27 = vld [vmem:[#allocation13_spill] sm:$0xff] }
 0x194   : > { %v3931_v45 = vadd.f32 %v3831_v19, %v932_v13  ;;  %v1412_v36 = vmul.f32 %v3915_v31, %v3915_v31  ;;  %v940_v37 = vadd.f32 %v4583_v8, %v3745_v0  ;;  %v1413_v63 = vmul.f32 %v3923_v3, %v3923_v3  ;;  %v4584_v19 = vld [vmem:[#allocation12_spill] sm:$0xff] }
 0x195   : > { %v1438_v35 = vadd.f32 %v1437_v43, %v1407_v42  ;;  %v1370_v46 = vadd.f32 %v1369_v34, %v3896_v48  ;;  %v1408_v47 = vmul.f32 %v3896_v48, %v3896_v48  ;;  %v3940_v7 = vadd.f32 %v1291_v22, %v937_v15  ;;  %v2983_v32 = vpop.f32.mrf.mxu1 }
 0x196   : > { %v945_v34 = vadd.f32 %v4585_v27, %v4584_v19  ;;  %v1414_v42 = vmul.f32 %v3931_v45, %v3931_v45  ;;  %v3947_v43 = vadd.f32 %v1294_v17, %v940_v37  ;;  %v953_v17 = vadd.f32 %v3759_v9, %v4588_v39 }
 0x197   : > { %v1371_v52 = vadd.f32 %v1370_v46, %v3891_v18  ;;  %v1439_v53 = vadd.f32 %v1438_v35, %v1408_v47  ;;  %v4586_v35 = vld [vmem:[#allocation14_spill] sm:$0xff]  ;;  %v4587_v46 = vld [vmem:[#allocation15_spill] sm:$0xff] }
 0x198   : > { %v948_v47 = vadd.f32 %v4587_v46, %v4586_v35  ;;  %v3953_v22 = vadd.f32 %v3861_v16, %v945_v34  ;;  %v3969_v15 = vadd.f32 %v1307_v29, %v953_v17 }
 0x199   : > { %v1372_v56 = vadd.f32 %v1371_v52, %v3900_v40  ;;  %v1440_v57 = vadd.f32 %v1439_v53, %v1409_v38  ;;  %v1415_v38 = vmul.f32 %v3940_v7, %v3940_v7 }
 0x19a   : > { %v1419_v29 = vmul.f32 %v3969_v15, %v3969_v15 }
 0x19b   : > { %v1373_v50 = vadd.f32 %v1372_v56, %v3908_v23  ;;  %v1441_v51 = vadd.f32 %v1440_v57, %v1410_v62  ;;  %v3960_v62 = vadd.f32 %v2979_v10, %v948_v47  ;;  %v1416_v56 = vmul.f32 %v3947_v43, %v3947_v43  ;;  %v4590_v10 = vld [vmem:[#allocation16_spill] sm:$0xff] }
 0x19d   : > { %v1374_v54 = vadd.f32 %v1373_v50, %v3915_v31  ;;  %v1442_v55 = vadd.f32 %v1441_v51, %v1411_v44  ;;  %v4589_v44 = vld [vmem:[#allocation21_spill] sm:$0xff]  ;;  %v1310_v50 = vpop.f32.mrf.mxu1  ;;  %v1417_v51 = vmul.f32 %v3953_v22, %v3953_v22  ;;  %v1418_v8 = vmul.f32 %v3960_v62, %v3960_v62 }
 0x19e   : > { %v956_v16 = vadd.f32 %v3783_v14, %v4589_v44 }
 0x19f   : > { %v1375_v60 = vadd.f32 %v1374_v54, %v3923_v3  ;;  %v1443_v61 = vadd.f32 %v1442_v55, %v1412_v36  ;;  %v4591_v54 = vld [vmem:[#allocation20_spill] sm:$0xff] }
 0x1a0   : > { %v961_v55 = vadd.f32 %v4591_v54, %v4590_v10  ;;  %v3976_v37 = vadd.f32 %v1310_v50, %v956_v16  ;;  %v4594_v10 = vmov 0.0  }
 0x1a1   : > { %v1376_v49 = vadd.f32 %v1375_v60, %v3931_v45  ;;  %v1444_v0 = vadd.f32 %v1443_v61, %v1413_v63  ;;  %v4592_v60 = vld [vmem:[#allocation19_spill] sm:$0xff] }
 0x1a2   : > { %v964_v61 = vadd.f32 %v3765_v2, %v4592_v60  ;;  %v3981_v19 = vadd.f32 %v2982_v1, %v961_v55 }
 0x1a3   : > { %v1377_v52 = vadd.f32 %v1376_v49, %v3940_v7  ;;  %v1445_v53 = vadd.f32 %v1444_v0, %v1414_v42  ;;  %v1420_v49 = vmul.f32 %v3976_v37, %v3976_v37 }
 0x1a4   : > { %v3986_v42 = vadd.f32 %v2983_v32, %v964_v61  ;;  %v1421_v46 = vmul.f32 %v3981_v19, %v3981_v19 }
 0x1a5   : > { %v1378_v57 = vadd.f32 %v1377_v52, %v3947_v43  ;;  %v1446_v13 = vadd.f32 %v1445_v53, %v1415_v38 }
 0x1a6   : > { %v1422_v47 = vmul.f32 %v3986_v42, %v3986_v42 }
 0x1a7   : > { %v1379_v36 = vadd.f32 %v1378_v57, %v3953_v22  ;;  %v1447_v9 = vadd.f32 %v1446_v13, %v1416_v56 }
 0x1a9   : > { %v1380_v63 = vadd.f32 %v1379_v36, %v3960_v62  ;;  %v1448_v14 = vadd.f32 %v1447_v9, %v1417_v51  ;;  %v4593_v9 = vld [vmem:[#allocation11_spill] sm:$0xff] }
 0x1ab   : > { %v1381_v27 = vadd.f32 %v1380_v63, %v3969_v15  ;;  %v1449_v34 = vadd.f32 %v1448_v14, %v1418_v8 }
 0x1ad   : > { %v1382_v0 = vadd.f32 %v1381_v27, %v3976_v37  ;;  %v1450_v35 = vadd.f32 %v1449_v34, %v1419_v29 }
 0x1af   : > { %v1383_v2 = vadd.f32 %v1382_v0, %v3981_v19  ;;  %v1451_v1 = vadd.f32 %v1450_v35, %v1420_v49 }
 0x1b1   : > { %v1384_v38 = vadd.f32 %v1383_v2, %v3986_v42  ;;  %v1452_v52 = vadd.f32 %v1451_v1, %v1421_v46 }
 0x1b3   : > { %v1385_v32 = vrot.slane %v1384_v38, 4  ;;  %v1453_v53 = vadd.f32 %v1452_v52, %v1422_v47  ;;  %v1759_v47 = vld [vmem:[%s4529_s2] sm:$0x1] }
 0x1b5   : > { %v1386_v39 = vadd.f32 %v1385_v32, %v1384_v38  ;;  %v1454_v17 = vrot.slane %v1453_v53, 4  ;;  %v1764_v38 = vlaneseq }
 0x1b7   : > { %v1387_v56 = vrot.slane %v1386_v39, 2  ;;  %v1455_v57 = vadd.f32 %v1454_v17, %v1453_v53  ;;  %v1765_v32 = vshrl.u32 %v1764_v38, 7 }
 0x1b9   : > { %v1388_v13 = vadd.f32 %v1387_v56, %v1386_v39  ;;  %v1456_v44 = vrot.slane %v1455_v57, 2  ;;  %v1761_v39 = vld [vmem:[%s4530_s3] sm:$0x1]  ;;  %v1766_v17 = vsub.s32 0, %v1765_v32 }
 0x1bb   : > { %v1389_v16 = vrot.slane %v1388_v13, 1  ;;  %v1457_v50 = vadd.f32 %v1456_v44, %v1455_v57 }
 0x1bd   : > { %v1390_v51 = vadd.f32 %v1389_v16, %v1388_v13  ;;  %v1458_v36 = vrot.slane %v1457_v50, 1  ;;  %v4595_v16 = vld [vmem:[#allocation22_spill] sm:$0xff] }
 0x1bf   : > { %2987 = vmatmul.mubr.f32.vlgmr.msra.gmra.mxu1 %v1390_v51  ;;  %v1459_v54 = vadd.f32 %v1458_v36, %v1457_v50 }
 0x1c0   : > { %2990 = vmatpush3.xpose.msra.mxu1 %v4593_v9  ;;  %2991 = vmatprep.mubr.msk.f32.mxu1 %vm3417_vm0, %v4594_v10 }
 0x1c1   : > { %2994 = vmatprep.subr.mxu1 %v4594_v10 }
 0x1c3   : > { %2992 = vmatmul.mubr.f32.vlgmr.msra.gmra.mxu1 %v1459_v54 }
 0x1c4   : > { %2996 = vmatprep.mubr.msk.f32.mxu1 %vm3417_vm0, %v4594_v10  ;;  %2995 = vmatpush3.msk.msra.mxu1 %vm1612_vm1, %v4593_v9 }
 0x1c5   : > { %2999 = vmatprep.subr.mxu1 %v4594_v10 }
 0x27f   : > { %v1527_v55 = vpop.f32.mrf.mxu1 }
 0x280   : > { %v1601_v8 = vmul.f32 0.0009765625, %v1527_v55 }
 0x281   : > { %v2988_v63 = vpop.f32.mrf.mxu1 }
 0x282   : > { %2997 = vmatmul.mubr.msk.f32.vlgmr.msra.gmra.mxu1 %vm1608_vm2, %v1601_v8  ;;  %v1603_v60 = vmul.f32 %v1601_v8, %v1601_v8 }
 0x283   : > { %v1597_v14 = vpop.f32.mrf.mxu1  ;;  %3000 = vmatpush3.msk.msra.mxu1 %vm1612_vm1, %v4593_v9  ;;  %3001 = vmatprep.mubr.msk.f32.mxu1 %vm3417_vm0, %v4594_v10 }
 0x284   : > { %v1602_v61 = vmul.f32 0.0009765625, %v1597_v14 }
 0x285   : > { %v2993_v29 = vpop.f32.mrf.mxu1 }
 0x286   : > { %v1604_v27 = vsub.f32 %v1602_v61, %v1603_v60 }
 0x288   : > { %v1605_v34 = vmax.f32 %v1604_v27, 0.0 }
 0x28a   : > { %v1606_v49 = vadd.f32 1e-05, %v1605_v34 }
 0x28c   : > { %3158 = vrsqrt.f32 %v1606_v49 }
 0x299   : > { %v3159_v0 = vpop.eup %3158 }
 0x29a   : > { %3002 = vmatmul.mubr.msk.f32.vlgmr.msra.gmra.mxu1 %vm1608_vm2, %v3159_v0 }
 0x342   : > { %v1682_v35 = vpop.f32.mrf.mxu1 }
 0x344   : > { %v2998_v46 = vpop.f32.mrf.mxu1 }
 0x35a   : > { %v1755_v2 = vpop.f32.mrf.mxu1 }
 0x35b   : > { %v1760_v52 = vmul.f32 %v1759_v47, %v1755_v2 }
 0x35c   : > { %v3003_v1 = vpop.f32.mrf.mxu1 }
 0x35d   : > { %v1762_v53 = vmul.f32 %v1760_v52, %v1682_v35  ;;  %v1767_v57 = vrot.slane %v1760_v52, %v1766_v17 }
 0x35f   : > { %v1763_v56 = vsub.f32 %v1761_v39, %v1762_v53  ;;  %v1768_v44 = vmul.f32 %v1767_v57, %v3763_v58  ;;  %v1769_v50 = vmul.f32 %v1767_v57, %v4595_v16  ;;  %v1770_v51 = vmul.f32 %v1767_v57, %v3769_v5 }
 0x360   : > { %v1771_v36 = vmul.f32 %v1767_v57, %v3777_v11  ;;  %v1772_v9 = vmul.f32 %v1767_v57, %v3788_v59  ;;  %v1773_v10 = vmul.f32 %v1767_v57, %v3806_v25  ;;  %v1774_v54 = vmul.f32 %v1767_v57, %v3801_v12 }
 0x361   : > { %v4014_v13 = vrot.slane %v1763_v56, %v1766_v17  ;;  %v1775_v55 = vmul.f32 %v1767_v57, %v3810_v20  ;;  %v1776_v8 = vmul.f32 %v1767_v57, %v3820_v4  ;;  %v1777_v63 = vmul.f32 %v1767_v57, %v3838_v33 }
 0x362   : > { %v1778_v58 = vmul.f32 %v1767_v57, %v3833_v24  ;;  %v1779_v14 = vmul.f32 %v1767_v57, %v3842_v21  ;;  %v1780_v5 = vmul.f32 %v1767_v57, %v3850_v6  ;;  %v1781_v59 = vmul.f32 %v1767_v57, %v3868_v41 }
 0x363   : > { %v4030_v11 = vadd.f32 %v4014_v13, %v1768_v44  ;;  %v1782_v25 = vmul.f32 %v1767_v57, %v3863_v26  ;;  %v1783_v12 = vmul.f32 %v1767_v57, %v3872_v30  ;;  %v4036_v20 = vadd.f32 %v4014_v13, %v1769_v50 }
 0x364   : > { %v1784_v4 = vmul.f32 %v1767_v57, %v3880_v28  ;;  %v1785_v24 = vmul.f32 %v1767_v57, %v3896_v48  ;;  %v1786_v33 = vmul.f32 %v1767_v57, %v3891_v18  ;;  %v4042_v21 = vadd.f32 %v4014_v13, %v1770_v51 }
 0x365   : > { %v1787_v6 = vmul.f32 %v1767_v57, %v3900_v40  ;;  %v1788_v41 = vmul.f32 %v1767_v57, %v3908_v23  ;;  %v1789_v26 = vmul.f32 %v1767_v57, %v3915_v31  ;;  %v4048_v30 = vadd.f32 %v4014_v13, %v1771_v36 }
 0x366   : > { %v4051_v60 = vmul.f32 %v1767_v57, %v3923_v3  ;;  %v4054_v28 = vmul.f32 %v1767_v57, %v3931_v45  ;;  %v4057_v18 = vadd.f32 %v4014_v13, %v1772_v9  ;;  %v1838_v48 = vmin.f32 %v4030_v11, 20.0 }
 0x367   : > { %v4061_v40 = vmul.f32 %v1767_v57, %v3940_v7  ;;  %v4064_v23 = vmul.f32 %v1767_v57, %v3947_v43  ;;  %v4067_v31 = vadd.f32 %v4014_v13, %v1773_v10  ;;  %v1839_v3 = vmin.f32 %v4036_v20, 20.0 }
 0x368   : > { %v4071_v61 = vmul.f32 %v1767_v57, %v3953_v22  ;;  %v4074_v45 = vmul.f32 %v1767_v57, %v3960_v62  ;;  %v4077_v29 = vadd.f32 %v4014_v13, %v1774_v54  ;;  %v1840_v7 = vmin.f32 %v4042_v21, 20.0 }
 0x369   : > { %v4081_v27 = vmul.f32 %v1767_v57, %v3969_v15  ;;  %v4084_v43 = vmul.f32 %v1767_v57, %v3976_v37  ;;  %v4087_v34 = vadd.f32 %v4014_v13, %v1775_v55  ;;  %v1841_v22 = vmin.f32 %v4048_v30, 20.0 }
 0x36a   : > { %v4091_v49 = vmul.f32 %v1767_v57, %v3981_v19  ;;  %v4094_v62 = vadd.f32 %v4014_v13, %v1776_v8  ;;  %v1842_v0 = vmin.f32 %v4057_v18, 20.0  ;;  %v1870_v35 = vmul.f32 1.442695, %v1838_v48 }
 0x36b   : > { %v4098_v15 = vmul.f32 %v1767_v57, %v3986_v42  ;;  %v4101_v37 = vadd.f32 %v4014_v13, %v1777_v63  ;;  %v1843_v46 = vmin.f32 %v4067_v31, 20.0  ;;  %v1872_v2 = vmul.f32 1.442695, %v1839_v3 }
 0x36c   : > { %v4105_v1 = vadd.f32 %v4014_v13, %v1778_v58  ;;  %v4108_v19 = vadd.f32 %v4014_v13, %v1779_v14  ;;  %v1844_v47 = vmin.f32 %v4077_v29, 20.0  ;;  %v1874_v38 = vmul.f32 1.442695, %v1840_v7 }
 0x36d   : > { %v4112_v52 = vadd.f32 %v4014_v13, %v1780_v5  ;;  %v4115_v42 = vadd.f32 %v4014_v13, %v1781_v59  ;;  %v1845_v32 = vmin.f32 %v4087_v34, 20.0  ;;  %v1876_v53 = vmul.f32 1.442695, %v1841_v22 }
 0x36e   : > { %v4119_v39 = vadd.f32 %v4014_v13, %v1782_v25  ;;  %v1846_v17 = vmin.f32 %v4094_v62, 20.0  ;;  %3160 = vpow2.f32 %v1870_v35  ;;  %v1878_v56 = vmul.f32 1.442695, %v1842_v0 }
 0x36f   : > { %v4123_v57 = vadd.f32 %v4014_v13, %v1783_v12  ;;  %v1847_v44 = vmin.f32 %v4101_v37, 20.0  ;;  %3162 = vpow2.f32 %v1872_v2  ;;  %v1880_v16 = vmul.f32 1.442695, %v1843_v46 }
 0x370   : > { %v4127_v50 = vadd.f32 %v4014_v13, %v1784_v4  ;;  %v1848_v51 = vmin.f32 %v4105_v1, 20.0  ;;  %3164 = vpow2.f32 %v1874_v38  ;;  %v1882_v36 = vmul.f32 1.442695, %v1844_v47 }
 0x371   : > { %v4131_v9 = vadd.f32 %v4014_v13, %v1785_v24  ;;  %v1849_v10 = vmin.f32 %v4108_v19, 20.0  ;;  %3166 = vpow2.f32 %v1876_v53  ;;  %v1884_v54 = vmul.f32 1.442695, %v1845_v32 }
 0x372   : > { %4596 = vst [vmem:[#allocation17_spill] sm:$0xff] %v4127_v50  ;;  %v4135_v55 = vadd.f32 %v4014_v13, %v1786_v33  ;;  %v1850_v8 = vmin.f32 %v4112_v52, 20.0  ;;  %3168 = vpow2.f32 %v1878_v56  ;;  %v1886_v63 = vmul.f32 1.442695, %v1846_v17 }
 0x373   : > { %4597 = vst [vmem:[#allocation12_spill] sm:$0xff] %v4131_v9  ;;  %v4139_v58 = vadd.f32 %v4014_v13, %v1787_v6  ;;  %v1851_v14 = vmin.f32 %v4115_v42, 20.0  ;;  %3170 = vpow2.f32 %v1880_v16  ;;  %v1888_v5 = vmul.f32 1.442695, %v1847_v44 }
 0x374   : > { %4598 = vst [vmem:[#allocation13_spill] sm:$0xff] %v4135_v55  ;;  %v4143_v59 = vadd.f32 %v4014_v13, %v1788_v41  ;;  %v1852_v25 = vmin.f32 %v4119_v39, 20.0  ;;  %3172 = vpow2.f32 %v1882_v36  ;;  %v1890_v12 = vmul.f32 1.442695, %v1848_v51 }
 0x375   : > { %4599 = vst [vmem:[#allocation14_spill] sm:$0xff] %v4139_v58  ;;  %v4147_v4 = vadd.f32 %v4014_v13, %v1789_v26  ;;  %v1853_v24 = vmin.f32 %v4123_v57, 20.0  ;;  %3174 = vpow2.f32 %v1884_v54  ;;  %v1892_v33 = vmul.f32 1.442695, %v1849_v10 }
 0x376   : > { %4600 = vst [vmem:[#allocation15_spill] sm:$0xff] %v4143_v59  ;;  %v4152_v6 = vadd.f32 %v4014_v13, %v4051_v60  ;;  %v1854_v48 = vmin.f32 %v4127_v50, 20.0  ;;  %3176 = vpow2.f32 %v1886_v63  ;;  %v1894_v41 = vmul.f32 1.442695, %v1850_v8 }
 0x377   : > { %4601 = vst [vmem:[#allocation18_spill] sm:$0xff] %v4147_v4  ;;  %v4157_v3 = vadd.f32 %v4014_v13, %v4054_v28  ;;  %v1855_v7 = vmin.f32 %v4131_v9, 20.0  ;;  %3178 = vpow2.f32 %v1888_v5  ;;  %v1896_v26 = vmul.f32 1.442695, %v1851_v14 }
 0x378   : > { %4602 = vst [vmem:[#allocation21_spill] sm:$0xff] %v4152_v6  ;;  %v4162_v22 = vadd.f32 %v4014_v13, %v4061_v40  ;;  %v4166_v60 = vadd.f32 %v4014_v13, %v4064_v23  ;;  %3180 = vpow2.f32 %v1890_v12  ;;  %v1898_v0 = vmul.f32 1.442695, %v1852_v25 }
 0x379   : > { %4603 = vst [vmem:[#allocation16_spill] sm:$0xff] %v4157_v3  ;;  %v4170_v35 = vadd.f32 %v4014_v13, %v4071_v61  ;;  %v1856_v28 = vmin.f32 %v4135_v55, 20.0  ;;  %3182 = vpow2.f32 %v1892_v33  ;;  %v1900_v46 = vmul.f32 1.442695, %v1853_v24 }
 0x37a   : > { %4604 = vst [vmem:[#allocation20_spill] sm:$0xff] %v4162_v22  ;;  %4605 = vst [vmem:[#allocation19_spill] sm:$0xff] %v4166_v60  ;;  %v4175_v2 = vadd.f32 %v4014_v13, %v4074_v45  ;;  %v4179_v40 = vadd.f32 %v4014_v13, %v4081_v27  ;;  %3184 = vpow2.f32 %v1894_v41  ;;  %v1902_v23 = vmul.f32 1.442695, %v1854_v48 }
 0x37b   : > { %4606 = vst [vmem:[#allocation11_spill] sm:$0xff] %v4170_v35  ;;  %v3161_v47 = vpop.eup %3160  ;;  %v4183_v38 = vadd.f32 %v4014_v13, %v4084_v43  ;;  %v1857_v61 = vmin.f32 %v4139_v58, 20.0  ;;  %3186 = vpow2.f32 %v1896_v26  ;;  %v1904_v32 = vmul.f32 1.442695, %v1855_v7 }
 0x37c   : > { %4607 = vst [vmem:[#allocation22_spill] sm:$0xff] %v4175_v2  ;;  %4608 = vst [vmem:[#allocation23_spill] sm:$0xff] %v4179_v40  ;;  %v3163_v53 = vpop.eup %3162  ;;  %v4188_v45 = vadd.f32 %v4014_v13, %v4091_v49  ;;  %v4192_v27 = vadd.f32 %v4014_v13, %v4098_v15  ;;  %v1858_v17 = vmin.f32 %v4143_v59, 20.0  ;;  %3188 = vpow2.f32 %v1898_v0 }
 0x37d   : > { %4609 = vst [vmem:[#allocation24_spill] sm:$0xff] %v4183_v38  ;;  %v3165_v56 = vpop.eup %3164  ;;  %v1859_v43 = vmin.f32 %v4147_v4, 20.0  ;;  %v1860_v44 = vmin.f32 %v4152_v6, 20.0  ;;  %3190 = vpow2.f32 %v1900_v46  ;;  %v1906_v16 = vmul.f32 1.442695, %v1856_v28 }
 0x37e   : > { %4610 = vst [vmem:[#allocation25_spill] sm:$0xff] %v4188_v45  ;;  %4611 = vst [vmem:[#allocation26_spill] sm:$0xff] %v4192_v27  ;;  %v3167_v51 = vpop.eup %3166  ;;  %v1861_v36 = vmin.f32 %v4157_v3, 20.0  ;;  %v1862_v49 = vmin.f32 %v4162_v22, 20.0  ;;  %v1863_v10 = vmin.f32 %v4166_v60, 20.0  ;;  %3192 = vpow2.f32 %v1902_v23 }
 0x37f   : > { %v3169_v13 = vpop.eup %3168  ;;  %v1864_v15 = vmin.f32 %v4170_v35, 20.0  ;;  %v1865_v54 = vmin.f32 %v4175_v2, 20.0  ;;  %3194 = vpow2.f32 %v1904_v32  ;;  %v1908_v8 = vmul.f32 1.442695, %v1857_v61 }
 0x380   : > { %v3171_v63 = vpop.eup %3170  ;;  %v1866_v14 = vmin.f32 %v4179_v40, 20.0  ;;  %v1867_v5 = vmin.f32 %v4183_v38, 20.0  ;;  %v1910_v25 = vmul.f32 1.442695, %v1858_v17  ;;  %v1934_v12 = vadd.f32 1.0, %v3161_v47 }
 0x381   : > { %v3173_v24 = vpop.eup %3172  ;;  %v1868_v33 = vmin.f32 %v4188_v45, 20.0  ;;  %3196 = vpow2.f32 %v1906_v16  ;;  %v1912_v48 = vmul.f32 1.442695, %v1859_v43  ;;  %v1935_v41 = vadd.f32 1.0, %v3163_v53 }
 0x382   : > { %v3175_v7 = vpop.eup %3174  ;;  %v1869_v26 = vmin.f32 %v4192_v27, 20.0  ;;  %v1914_v0 = vmul.f32 1.442695, %v1860_v44  ;;  %v1916_v28 = vmul.f32 1.442695, %v1861_v36  ;;  %v1936_v46 = vadd.f32 1.0, %v3165_v56 }
 0x383   : > { %v3177_v23 = vpop.eup %3176  ;;  %3198 = vpow2.f32 %v1908_v8  ;;  %v1918_v61 = vmul.f32 1.442695, %v1862_v49  ;;  %v1937_v32 = vadd.f32 1.0, %v3167_v51  ;;  %v1938_v40 = vadd.f32 1.0, %v3169_v13 }
 0x384   : > { %v3179_v38 = vpop.eup %3178  ;;  %3200 = vpow2.f32 %v1910_v25  ;;  %v1920_v47 = vmul.f32 1.442695, %v1863_v10  ;;  %v1922_v17 = vmul.f32 1.442695, %v1864_v15  ;;  %v4206_v2 = vmul.f32 %v1934_v12, %v1934_v12 }
 0x385   : > { %v3181_v16 = vpop.eup %3180  ;;  %v1924_v43 = vmul.f32 1.442695, %v1865_v54  ;;  %v1939_v53 = vadd.f32 1.0, %v3171_v63  ;;  %v1940_v45 = vadd.f32 1.0, %v3173_v24  ;;  %v4208_v35 = vmul.f32 %v1935_v41, %v1935_v41 }
 0x386   : > { %v3183_v44 = vpop.eup %3182  ;;  %3202 = vpow2.f32 %v1912_v48  ;;  %v1926_v56 = vmul.f32 1.442695, %v1866_v14  ;;  %v1928_v36 = vmul.f32 1.442695, %v1867_v5  ;;  %v4210_v8 = vmul.f32 %v1936_v46, %v1936_v46 }
 0x387   : > { %v3185_v51 = vpop.eup %3184  ;;  %v1930_v49 = vmul.f32 1.442695, %v1868_v33  ;;  %v1941_v13 = vadd.f32 1.0, %v3175_v7  ;;  %v4212_v25 = vmul.f32 %v1937_v32, %v1937_v32  ;;  %v4214_v10 = vmul.f32 %v1938_v40, %v1938_v40 }
 0x388   : > { %v3187_v15 = vpop.eup %3186  ;;  %3204 = vpow2.f32 %v1914_v0  ;;  %v1932_v54 = vmul.f32 1.442695, %v1869_v26  ;;  %v1942_v63 = vadd.f32 1.0, %v3177_v23  ;;  %v2563_v12 = vadd.f32 -1.0, %v4206_v2 }
 0x389   : > { %v3189_v24 = vpop.eup %3188  ;;  %v1943_v41 = vadd.f32 1.0, %v3179_v38  ;;  %v4217_v48 = vmul.f32 %v1939_v53, %v1939_v53  ;;  %v4219_v14 = vmul.f32 %v1940_v45, %v1940_v45  ;;  %v2564_v5 = vadd.f32 -1.0, %v4208_v35 }
 0x38a   : > { %v3191_v33 = vpop.eup %3190  ;;  %3206 = vpow2.f32 %v1916_v28  ;;  %v1944_v7 = vadd.f32 1.0, %v3181_v16  ;;  %v1945_v46 = vadd.f32 1.0, %v3183_v44  ;;  %v2565_v40 = vadd.f32 -1.0, %v4210_v8 }
 0x38b   : > { %v3193_v32 = vpop.eup %3192  ;;  %v1946_v0 = vadd.f32 1.0, %v3185_v51  ;;  %v4223_v26 = vmul.f32 %v1941_v13, %v1941_v13  ;;  %v2566_v23 = vadd.f32 -1.0, %v4212_v25  ;;  %v2567_v38 = vadd.f32 -1.0, %v4214_v10 }
 0x38c   : > { %v3195_v53 = vpop.eup %3194  ;;  %3208 = vpow2.f32 %v1918_v61  ;;  %v1947_v45 = vadd.f32 1.0, %v3187_v15  ;;  %v1948_v27 = vadd.f32 1.0, %v3189_v24  ;;  %v4227_v60 = vmul.f32 %v1942_v63, %v1942_v63 }
 0x38d   : > { %v1949_v22 = vadd.f32 1.0, %v3191_v33  ;;  %v4229_v28 = vmul.f32 %v1943_v41, %v1943_v41  ;;  %v4232_v16 = vadd.f32 -1.0, %v4217_v48  ;;  %v4235_v44 = vadd.f32 -1.0, %v4219_v14 }
 0x38e   : > { %v3197_v51 = vpop.eup %3196  ;;  %3210 = vpow2.f32 %v1920_v47  ;;  %v1950_v13 = vadd.f32 1.0, %v3193_v32  ;;  %v4237_v3 = vmul.f32 %v1944_v7, %v1944_v7  ;;  %v4239_v6 = vmul.f32 %v1945_v46, %v1945_v46 }
 0x38f   : > { %3212 = vpow2.f32 %v1922_v17  ;;  %v1951_v61 = vadd.f32 1.0, %v3195_v53  ;;  %v4241_v15 = vmul.f32 %v1946_v0, %v1946_v0  ;;  %v4244_v63 = vadd.f32 -1.0, %v4223_v26 }
 0x390   : > { %v3199_v24 = vpop.eup %3198  ;;  %3214 = vpow2.f32 %v1924_v43  ;;  %v4246_v41 = vmul.f32 %v1947_v45, %v1947_v45  ;;  %v4248_v33 = vmul.f32 %v1948_v27, %v1948_v27  ;;  %v4251_v47 = vadd.f32 -1.0, %v4227_v60 }
 0x391   : > { %v3201_v7 = vpop.eup %3200  ;;  %3216 = vpow2.f32 %v1926_v56  ;;  %v1952_v46 = vadd.f32 1.0, %v3197_v51  ;;  %v4253_v32 = vmul.f32 %v1949_v22, %v1949_v22  ;;  %v4256_v17 = vadd.f32 -1.0, %v4229_v28 }
 0x392   : > { %3218 = vpow2.f32 %v1928_v36  ;;  %v4258_v0 = vmul.f32 %v1950_v13, %v1950_v13  ;;  %v4261_v43 = vadd.f32 -1.0, %v4237_v3  ;;  %v4264_v27 = vadd.f32 -1.0, %v4239_v6 }
 0x393   : > { %v3203_v53 = vpop.eup %3202  ;;  %3220 = vpow2.f32 %v1930_v49  ;;  %v1953_v45 = vadd.f32 1.0, %v3199_v24  ;;  %v4266_v4 = vmul.f32 %v1951_v61, %v1951_v61  ;;  %v4269_v22 = vadd.f32 -1.0, %v4241_v15 }
 0x394   : > { %3222 = vpow2.f32 %v1932_v54  ;;  %v1954_v56 = vadd.f32 1.0, %v3201_v7  ;;  %v4272_v36 = vadd.f32 -1.0, %v4246_v41  ;;  %v4275_v51 = vadd.f32 -1.0, %v4248_v33 }
 0x395   : > { %v3205_v13 = vpop.eup %3204  ;;  %v4277_v59 = vmul.f32 %v1952_v46, %v1952_v46  ;;  %v4280_v58 = vadd.f32 -1.0, %v4253_v32  ;;  %v4283_v49 = vmul.f32 %v2563_v12, %v4030_v11  ;;  %v2062_v61 = vadd.f32 1.0, %v4206_v2 }
 0x396   : > { %v1955_v24 = vadd.f32 1.0, %v3203_v53  ;;  %v4287_v54 = vadd.f32 -1.0, %v4258_v0  ;;  %v4290_v7 = vmul.f32 %v2564_v5, %v4036_v20  ;;  %v2063_v55 = vadd.f32 1.0, %v4208_v35 }
 0x397   : > { %v3207_v9 = vpop.eup %3206  ;;  %v4293_v46 = vmul.f32 %v1953_v45, %v1953_v45  ;;  %v4296_v50 = vadd.f32 -1.0, %v4266_v4  ;;  %v4299_v11 = vmul.f32 %v2565_v40, %v4042_v21  ;;  %v2064_v2 = vadd.f32 1.0, %v4210_v8 }
 0x398   : > { %4612 = vst [vmem:[#allocation27_spill] sm:$0xff] %v4287_v54  ;;  %v1956_v12 = vadd.f32 1.0, %v3205_v13  ;;  %v4302_v53 = vmul.f32 %v1954_v56, %v1954_v56  ;;  %v4305_v54 = vmul.f32 %v2566_v23, %v4048_v30  ;;  %v2065_v20 = vadd.f32 1.0, %v4212_v25 }
 0x399   : > { %v3209_v35 = vpop.eup %3208  ;;  %v4309_v5 = vadd.f32 -1.0, %v4277_v59  ;;  %v4312_v45 = vmul.f32 %v2567_v38, %v4057_v18  ;;  %v2066_v21 = vadd.f32 1.0, %v4214_v10  ;;  %3224 = vrcp.f32 %v2062_v61 }
 0x39a   : > { %v1957_v40 = vadd.f32 1.0, %v3207_v9  ;;  %v4315_v8 = vmul.f32 %v1955_v24, %v1955_v24  ;;  %v2067_v56 = vadd.f32 1.0, %v4217_v48  ;;  %3226 = vrcp.f32 %v2063_v55 }
 0x39b   : > { %v3211_v30 = vpop.eup %3210  ;;  %v4319_v23 = vadd.f32 -1.0, %v4293_v46  ;;  %v4323_v25 = vmul.f32 %v4232_v16, %v4067_v31  ;;  %v2068_v18 = vadd.f32 1.0, %v4219_v14  ;;  %3228 = vrcp.f32 %v2064_v2 }
 0x39c   : > { %v3213_v38 = vpop.eup %3212  ;;  %v1958_v10 = vadd.f32 1.0, %v3209_v35  ;;  %v4326_v13 = vmul.f32 %v1956_v12, %v1956_v12  ;;  %v2069_v9 = vadd.f32 1.0, %v4223_v26  ;;  %3230 = vrcp.f32 %v2065_v20 }
 0x39d   : > { %v3215_v48 = vpop.eup %3214  ;;  %v4330_v55 = vadd.f32 -1.0, %v4302_v53  ;;  %v4334_v61 = vmul.f32 %v4235_v44, %v4077_v29  ;;  %v2070_v31 = vadd.f32 1.0, %v4227_v60  ;;  %3232 = vrcp.f32 %v2066_v21 }
 0x39e   : > { %v3217_v14 = vpop.eup %3216  ;;  %v1959_v16 = vadd.f32 1.0, %v3211_v30  ;;  %v4337_v24 = vmul.f32 %v1957_v40, %v1957_v40  ;;  %v2071_v2 = vadd.f32 1.0, %v4229_v28  ;;  %3234 = vrcp.f32 %v2067_v56 }
 0x39f   : > { %v3219_v26 = vpop.eup %3218  ;;  %v1960_v12 = vadd.f32 1.0, %v3213_v38  ;;  %v4341_v20 = vadd.f32 -1.0, %v4315_v8  ;;  %v2072_v35 = vadd.f32 1.0, %v4237_v3  ;;  %3236 = vrcp.f32 %v2068_v18 }
 0x3a0   : > { %v3221_v29 = vpop.eup %3220  ;;  %v4344_v44 = vmul.f32 %v1958_v10, %v1958_v10  ;;  %v4348_v60 = vmul.f32 %v4244_v63, %v4087_v34  ;;  %v2073_v21 = vadd.f32 1.0, %v4239_v6  ;;  %3238 = vrcp.f32 %v2069_v9 }
 0x3a1   : > { %v3223_v28 = vpop.eup %3222  ;;  %v1961_v40 = vadd.f32 1.0, %v3215_v48  ;;  %v4353_v56 = vmul.f32 %v4251_v47, %v4094_v62  ;;  %v2074_v30 = vadd.f32 1.0, %v4241_v15  ;;  %3240 = vrcp.f32 %v2070_v31 }
 0x3a2   : > { %v1962_v3 = vadd.f32 1.0, %v3217_v14  ;;  %v4356_v18 = vmul.f32 %v1959_v16, %v1959_v16  ;;  %v2075_v38 = vadd.f32 1.0, %v4246_v41  ;;  %3242 = vrcp.f32 %v2071_v2 }
 0x3a3   : > { %v4359_v34 = vmul.f32 %v1960_v12, %v1960_v12  ;;  %v4363_v6 = vmul.f32 %v4256_v17, %v4101_v37  ;;  %v2076_v63 = vadd.f32 1.0, %v4248_v33  ;;  %3244 = vrcp.f32 %v2072_v35 }
 0x3a4   : > { %v1963_v62 = vadd.f32 1.0, %v3219_v26  ;;  %v4368_v15 = vmul.f32 %v4261_v43, %v4105_v1  ;;  %v2077_v47 = vadd.f32 1.0, %v4253_v32  ;;  %3246 = vrcp.f32 %v2073_v21 }
 0x3a5   : > { %v4371_v10 = vmul.f32 %v1961_v40, %v1961_v40  ;;  %v4375_v41 = vmul.f32 %v4264_v27, %v4108_v19  ;;  %v2078_v37 = vadd.f32 1.0, %v4258_v0  ;;  %3248 = vrcp.f32 %v2074_v30 }
 0x3a6   : > { %v3225_v17 = vpop.eup %3224  ;;  %v1964_v33 = vadd.f32 1.0, %v3221_v29  ;;  %v4379_v9 = vmul.f32 %v1962_v3, %v1962_v3  ;;  %v2079_v1 = vadd.f32 1.0, %v4266_v4  ;;  %3250 = vrcp.f32 %v2075_v38 }
 0x3a7   : > { %v3227_v43 = vpop.eup %3226  ;;  %v4384_v32 = vmul.f32 %v4269_v22, %v4112_v52  ;;  %v2080_v48 = vadd.f32 1.0, %v4277_v59  ;;  %3252 = vrcp.f32 %v2076_v63  ;;  %v2126_v19 = vmul.f32 %v3225_v17, %v4283_v49 }
 0x3a8   : > { %v3229_v0 = vpop.eup %3228  ;;  %v1965_v27 = vadd.f32 1.0, %v3223_v28  ;;  %v2081_v31 = vadd.f32 1.0, %v4293_v46  ;;  %3254 = vrcp.f32 %v2077_v47  ;;  %v2127_v14 = vmul.f32 %v3227_v43, %v4290_v7 }
 0x3a9   : > { %v3231_v16 = vpop.eup %3230  ;;  %v4390_v4 = vmul.f32 %v1963_v62, %v1963_v62  ;;  %v2082_v2 = vadd.f32 1.0, %v4302_v53  ;;  %3256 = vrcp.f32 %v2078_v37  ;;  %v2128_v52 = vmul.f32 %v3229_v0, %v4299_v11 }
 0x3aa   : > { %v3233_v59 = vpop.eup %3232  ;;  %v2083_v22 = vadd.f32 1.0, %v4315_v8  ;;  %3258 = vrcp.f32 %v2079_v1  ;;  %v2129_v49 = vmul.f32 %v3231_v16, %v4305_v54  ;;  %v2668_v26 = vpack.c.bf16 %v2127_v14, %v2126_v19 }
 0x3ab   : > { %v3235_v46 = vpop.eup %3234  ;;  %v2043_v7 = vmul.f32 %v4272_v36, %v4115_v42  ;;  %v2084_v12 = vadd.f32 1.0, %v4326_v13  ;;  %3260 = vrcp.f32 %v2080_v48  ;;  %v2130_v53 = vmul.f32 %v3233_v59, %v4312_v45 }
 0x3ac   : > { %v3237_v35 = vpop.eup %3236  ;;  %v2085_v29 = vadd.f32 1.0, %v4337_v24  ;;  %3262 = vrcp.f32 %v2081_v31  ;;  %v2131_v11 = vmul.f32 %v3235_v46, %v4323_v25  ;;  %2669 = vst [vmem:[%s4404_s15] sm:$0xff] %v2668_v26   ;;  %v2673_v54 = vpack.c.bf16 %v2129_v49, %v2128_v52  ;;  %v4614_v52 = vld [vmem:[#allocation27_spill] sm:$0xff] }
 0x3ad   : > { %v3239_v8 = vpop.eup %3238  ;;  %v4407_v42 = vmul.f32 %v1964_v33, %v1964_v33  ;;  %v2086_v36 = vadd.f32 1.0, %v4344_v44  ;;  %3264 = vrcp.f32 %v2082_v2  ;;  %v2132_v45 = vmul.f32 %v3237_v35, %v4334_v61  ;;  %v4613_v2 = vld [vmem:[#allocation17_spill] sm:$0xff] }
 0x3ae   : > { %v3241_v21 = vpop.eup %3240  ;;  %v2087_v28 = vadd.f32 1.0, %v4356_v18  ;;  %3266 = vrcp.f32 %v2083_v22  ;;  %v2133_v25 = vmul.f32 %v3239_v8, %v4348_v60  ;;  %2745 = vst [vmem:[%s4404_s15 + $0x8] sm:$0xff] %v2673_v54   ;;  %v2678_v40 = vpack.c.bf16 %v2131_v11, %v2130_v53  ;;  %v4615_v22 = vld [vmem:[#allocation12_spill] sm:$0xff] }
 0x3af   : > { %v3243_v30 = vpop.eup %3242  ;;  %v4414_v3 = vmul.f32 %v1965_v27, %v1965_v27  ;;  %v2088_v38 = vadd.f32 1.0, %v4359_v34  ;;  %3268 = vrcp.f32 %v2084_v12  ;;  %v2134_v63 = vmul.f32 %v3241_v21, %v4353_v56  ;;  %v4616_v12 = vld [vmem:[#allocation13_spill] sm:$0xff] }
 0x3b0   : > { %v3245_v62 = vpop.eup %3244  ;;  %v2089_v61 = vadd.f32 1.0, %v4371_v10  ;;  %3270 = vrcp.f32 %v2085_v29  ;;  %v2135_v47 = vmul.f32 %v3243_v30, %v4363_v6  ;;  %2746 = vst [vmem:[%s4404_s15 + $0x10] sm:$0xff] %v2678_v40   ;;  %v2683_v37 = vpack.c.bf16 %v2133_v25, %v2132_v45  ;;  %v4617_v29 = vld [vmem:[#allocation14_spill] sm:$0xff]  ;;  %v4618_v45 = vld [vmem:[#allocation15_spill] sm:$0xff] }
 0x3b1   : > { %v3247_v60 = vpop.eup %3246  ;;  %v2044_v17 = vmul.f32 %v4275_v51, %v4119_v39  ;;  %v2090_v33 = vadd.f32 1.0, %v4379_v9  ;;  %3272 = vrcp.f32 %v2086_v36  ;;  %v2136_v1 = vmul.f32 %v3245_v62, %v4368_v15  ;;  %v4619_v25 = vld [vmem:[#allocation18_spill] sm:$0xff]  ;;  %v4620_v62 = vld [vmem:[#allocation21_spill] sm:$0xff] }
 0x3b2   : > { %v3249_v56 = vpop.eup %3248  ;;  %v2091_v43 = vadd.f32 1.0, %v4390_v4  ;;  %3274 = vrcp.f32 %v2087_v28  ;;  %v2137_v48 = vmul.f32 %v3247_v60, %v4375_v41  ;;  %2747 = vst [vmem:[%s4404_s15 + $0x18] sm:$0xff] %v2683_v37   ;;  %v2688_v6 = vpack.c.bf16 %v2135_v47, %v2134_v63  ;;  %v4621_v37 = vld [vmem:[#allocation16_spill] sm:$0xff] }
 0x3b3   : > { %v3251_v19 = vpop.eup %3250  ;;  %v2045_v0 = vmul.f32 %v4280_v58, %v4123_v57  ;;  %v2092_v39 = vadd.f32 1.0, %v4407_v42  ;;  %3276 = vrcp.f32 %v2088_v38  ;;  %v2138_v51 = vmul.f32 %v3249_v56, %v4384_v32 }
 0x3b4   : > { %v3253_v15 = vpop.eup %3252  ;;  %v2093_v27 = vadd.f32 1.0, %v4414_v3  ;;  %3278 = vrcp.f32 %v2089_v61  ;;  %v2139_v31 = vmul.f32 %v3251_v19, %v2043_v7  ;;  %2748 = vst [vmem:[%s4404_s15 + $0x20] sm:$0xff] %v2688_v6   ;;  %v2693_v14 = vpack.c.bf16 %v2137_v48, %v2136_v1  ;;  %v4622_v1 = vld [vmem:[#allocation20_spill] sm:$0xff]  ;;  %v4623_v6 = vld [vmem:[#allocation19_spill] sm:$0xff] }
 0x3b5   : > { %v3255_v41 = vpop.eup %3254  ;;  %v2585_v16 = vadd.f32 -1.0, %v4326_v13  ;;  %v2046_v59 = vmul.f32 %v4614_v52, %v4613_v2  ;;  %3280 = vrcp.f32 %v2090_v33  ;;  %v2140_v57 = vmul.f32 %v3253_v15, %v2044_v17  ;;  %v4624_v15 = vld [vmem:[#allocation11_spill] sm:$0xff] }
 0x3b6   : > { %v3257_v58 = vpop.eup %3256  ;;  %v2047_v32 = vmul.f32 %v4296_v50, %v4615_v22  ;;  %3282 = vrcp.f32 %v2091_v43  ;;  %v2141_v49 = vmul.f32 %v3255_v41, %v2045_v0  ;;  %2749 = vst [vmem:[%s4404_s15 + $0x28] sm:$0xff] %v2693_v14   ;;  %v2698_v26 = vpack.c.bf16 %v2139_v31, %v2138_v51  ;;  %v4625_v41 = vld [vmem:[#allocation22_spill] sm:$0xff] }
 0x3b7   : > { %v3259_v46 = vpop.eup %3258  ;;  %v2586_v7 = vadd.f32 -1.0, %v4337_v24  ;;  %v2048_v13 = vmul.f32 %v4309_v5, %v4616_v12  ;;  %3284 = vrcp.f32 %v2092_v39  ;;  %v2142_v53 = vmul.f32 %v3257_v58, %v2046_v59  ;;  %v4626_v59 = vld [vmem:[#allocation23_spill] sm:$0xff] }
 0x3b8   : > { %v3261_v35 = vpop.eup %3260  ;;  %v2049_v11 = vmul.f32 %v4319_v23, %v4617_v29  ;;  %3286 = vrcp.f32 %v2093_v27  ;;  %v2143_v54 = vmul.f32 %v3259_v46, %v2047_v32  ;;  %2750 = vst [vmem:[%s4404_s15 + $0x30] sm:$0xff] %v2698_v26   ;;  %v2703_v50 = vpack.c.bf16 %v2141_v49, %v2140_v57  ;;  %v4628_v46 = vld [vmem:[#allocation25_spill] sm:$0xff] }
 0x3b9   : > { %v3263_v8 = vpop.eup %3262  ;;  %v2587_v36 = vadd.f32 -1.0, %v4344_v44  ;;  %v2050_v24 = vmul.f32 %v4330_v55, %v4618_v45  ;;  %v2144_v21 = vmul.f32 %v3261_v35, %v2048_v13  ;;  %v2588_v28 = vadd.f32 -1.0, %v4356_v18 }
 0x3ba   : > { %v3265_v5 = vpop.eup %3264  ;;  %v2051_v40 = vmul.f32 %v4341_v20, %v4619_v25  ;;  %v2145_v30 = vmul.f32 %v3263_v8, %v2049_v11  ;;  %2751 = vst [vmem:[%s4404_s15 + $0x38] sm:$0xff] %v2703_v50   ;;  %v2708_v23 = vpack.c.bf16 %v2143_v54, %v2142_v53  ;;  %v2589_v63 = vadd.f32 -1.0, %v4359_v34  ;;  %v4629_v53 = vld [vmem:[#allocation26_spill] sm:$0xff] }
 0x3bb   : > { %v3267_v38 = vpop.eup %3266  ;;  %v2052_v61 = vmul.f32 %v2585_v16, %v4620_v62  ;;  %v2146_v44 = vmul.f32 %v3265_v5, %v2050_v24  ;;  %v2590_v55 = vadd.f32 -1.0, %v4371_v10  ;;  %v2053_v60 = vmul.f32 %v2586_v7, %v4621_v37 }
 0x3bc   : > { %v3269_v47 = vpop.eup %3268  ;;  %v2147_v17 = vmul.f32 %v3267_v38, %v2051_v40  ;;  %2752 = vst [vmem:[%s4404_s15 + $0x40] sm:$0xff] %v2708_v23   ;;  %v2713_v18 = vpack.c.bf16 %v2145_v30, %v2144_v21  ;;  %v2591_v20 = vadd.f32 -1.0, %v4379_v9  ;;  %v2054_v56 = vmul.f32 %v2587_v36, %v4622_v1 }
 0x3bd   : > { %v3271_v33 = vpop.eup %3270  ;;  %v2148_v43 = vmul.f32 %v3269_v47, %v2052_v61  ;;  %v2592_v48 = vadd.f32 -1.0, %v4390_v4  ;;  %v2055_v19 = vmul.f32 %v2588_v28, %v4623_v6  ;;  %v2593_v51 = vadd.f32 -1.0, %v4407_v42  ;;  %v4627_v42 = vld [vmem:[#allocation24_spill] sm:$0xff] }
 0x3be   : > { %v3273_v34 = vpop.eup %3272  ;;  %v2149_v0 = vmul.f32 %v3271_v33, %v2053_v60  ;;  %2753 = vst [vmem:[%s4404_s15 + $0x48] sm:$0xff] %v2713_v18   ;;  %v2718_v10 = vpack.c.bf16 %v2147_v17, %v2146_v44  ;;  %v2056_v27 = vmul.f32 %v2589_v63, %v4624_v15  ;;  %v2594_v14 = vadd.f32 -1.0, %v4414_v3 }
 0x3bf   : > { %v3275_v39 = vpop.eup %3274  ;;  %v2150_v31 = vmul.f32 %v3273_v34, %v2054_v56  ;;  %v2057_v16 = vmul.f32 %v2590_v55, %v4625_v41  ;;  %v2058_v57 = vmul.f32 %v2591_v20, %v4626_v59  ;;  %v2059_v32 = vmul.f32 %v2592_v48, %v4627_v42 }
 0x3c0   : > { %v3277_v9 = vpop.eup %3276  ;;  %v2151_v2 = vmul.f32 %v3275_v39, %v2055_v19  ;;  %2754 = vst [vmem:[%s4404_s15 + $0x50] sm:$0xff] %v2718_v10   ;;  %v2723_v4 = vpack.c.bf16 %v2149_v0, %v2148_v43  ;;  %v2060_v7 = vmul.f32 %v2593_v51, %v4628_v46  ;;  %v2061_v35 = vmul.f32 %v2594_v14, %v4629_v53 }
 0x3c1   : > { %v3279_v52 = vpop.eup %3278  ;;  %v2152_v58 = vmul.f32 %v3277_v9, %v2056_v27 }
 0x3c2   : > { %v3281_v22 = vpop.eup %3280  ;;  %v2153_v49 = vmul.f32 %v3279_v52, %v2057_v16  ;;  %2755 = vst [vmem:[%s4404_s15 + $0x58] sm:$0xff] %v2723_v4   ;;  %v2728_v26 = vpack.c.bf16 %v2151_v2, %v2150_v31 }
 0x3c3   : > { %v3283_v3 = vpop.eup %3282  ;;  %v2154_v12 = vmul.f32 %v3281_v22, %v2058_v57 }
 0x3c4   : > { %v3285_v13 = vpop.eup %3284  ;;  %v2155_v29 = vmul.f32 %v3283_v3, %v2059_v32  ;;  %2756 = vst [vmem:[%s4404_s15 + $0x60] sm:$0xff] %v2728_v26   ;;  %v2733_v11 = vpack.c.bf16 %v2153_v49, %v2152_v58 }
 0x3c5   : > { %v3287_v54 = vpop.eup %3286  ;;  %v2156_v50 = vmul.f32 %v3285_v13, %v2060_v7 }
 0x3c6   : > { %v2157_v8 = vmul.f32 %v3287_v54, %v2061_v35  ;;  %2757 = vst [vmem:[%s4404_s15 + $0x68] sm:$0xff] %v2733_v11   ;;  %v2738_v36 = vpack.c.bf16 %v2155_v29, %v2154_v12 }
 0x3c8   : > { %2758 = vst [vmem:[%s4404_s15 + $0x70] sm:$0xff] %v2738_v36   ;;  %v2743_v45 = vpack.c.bf16 %v2157_v8, %v2156_v50 }
 0x3ca   : > { %2759 = vst [vmem:[%s4404_s15 + $0x78] sm:$0xff] %v2743_v45  }
 0x3cb   : > { %3355 = shalt.err (!%p3352_p0)
}
 0x3cc   : > { %s3356_s10 = scalar_lea.hbm %s4480_s27, 2048  ;;  %s3360_s7 = scalar_lea.hbm %s4532_s5, 4096 }
 0x3cd   : > { %p3357_p11 = scmp.ne.s32.totalorder %s4480_s27, %s3356_s10  ;;  %p3361_p4 = scmp.lt.s32.totalorder %s4480_s27, %s4532_s5 }
 0x3ce   : > { %p3362_p6 = scmp.lt.s32.totalorder %s3360_s7, %s3356_s10 }
 0x3cf   : > { %p3358_p2 = pnand %p3357_p11, %p4630_p5 }
 0x3d0   : > { %p3363_p8 = por %p3362_p6, %p3361_p4 }
 0x3d1   : > { %p3359_p1 = pneg %p3358_p2 }
 0x3d3   : > { %p3364_p3 = pnand %p3363_p8, %p3359_p1 }
 0x3d5   : > { %3367 = shalt.err (!%p3364_p3)
}
 0x3d6   : > { %s3419_s17 = smov 64   ;;  %s3420_s12 = smov 4  }
 0x3d7   : > { %3029 = dma.vmem_to_hbm [thread:$0]  (%p4630_p5), %s4482_s6, 2048, %s4480_s27, %s2319_s22, %s3419_s17, %s3419_s17, %s3420_s12  }
 0x3d8 PF: > { %s2347_s9 = sand.u32 1, %s3398_s18   ;;  %p4631_p7 = scmp.ne.s32.totalorder %s4560_s25, 0 }
 0x3d9   : > { %p4632_p9 = scmp.ge.s32.totalorder %s3410_s21, 2  ;;  %s2348_s16 = scalar_lea.sflag [#allocation4], %s2347_s9 }
 0x3db   : > { %p3040_p10 = pnand %p4632_p9, %p4631_p7 }
 0x3dd   : > { %p3041_p12 = pneg %p3040_p10 }
 0x3df   : > { %3393 = dma.done.wait (%p3041_p12), %s2348_s16, 2048  }
 0x3e0   : > { %3395 = vsyncadd (%p3041_p12), %s2348_s16, 4294965248  ;;  %p19_p13 = scmp.ge.s32.totalorder %s3505_s30, 4   ;;  %s4633_s18 = smov %s3402_s19 }
 0x3e1   : > { %s4634_s19 = smov %s3406_s20  ;;  %s4635_s20 = smov %s3525_s13 }
 0x3e2   : > { %s4636_s21 = smov %s3505_s30  ;;  %21 = sbr.rel (!%p19_p13) target bundleno = 6 (0x6), region = 93 }
 0x3e7   :  { %2353 = vsyncpa [#allocation3], 1 }
 0x3e8   :  { %2355 = vsyncpa [#allocation3 + $0x1], 1 }
 0x3e9   :  { %2356 = vsyncpa [#allocation6], 1 }
 0x3ea   :  { %2357 = vsyncpa [#allocation4], 1 }
 0x3eb   :  { %2359 = vsyncpa [#allocation4 + $0x1], 1 }

</bundles_post_ra>
